<compile_context>
chip_gen: v7x
topology: tpu7x:2x2x1
jax: 0.10.0
libtpu: 0.0.40
codegen_flags: <defaults>
</compile_context>

<pallas_src>
import functools

import jax
import jax.numpy as jnp
from jax.experimental import pallas as pl
from jax.experimental.pallas import tpu as pltpu


# ----------------------------- kernel body ---------------------------------


def _mlp_kernel(x_ref, w1_ref, b1_ref, gamma_ref, beta_ref, w2_ref, b2_ref,
                o_ref, *, eps, inv_h, n_sub):
    """Fused Linear -> GELU(erf) -> LayerNorm -> Linear on one batch tile."""
    # Hoisted (1, F) f32 lane vectors.
    b1 = b1_ref[...].astype(jnp.float32)
    gamma = gamma_ref[...].astype(jnp.float32)
    beta = beta_ref[...].astype(jnp.float32)
    b2 = b2_ref[...].astype(jnp.float32)

    tb = x_ref.shape[0]
    sub = tb // n_sub

    # Static sub-chunk unroll: independent chains let the scheduler overlap
    # chunk k+1's MXU matmul with chunk k's VPU/EUP GELU + LayerNorm work.
    for c in range(n_sub):
        lo, hi = c * sub, (c + 1) * sub

        # Linear 1: native-dtype operands on the MXU, f32 accumulation.
        h = jnp.dot(x_ref[lo:hi, :], w1_ref[...],
                    preferred_element_type=jnp.float32)
        h = h + b1

        # GELU (exact, erf-based -- PyTorch nn.GELU default).
        h = 0.5 * h * (1.0 + jax.lax.erf(h * 0.7071067811865476))

        # LayerNorm over the hidden axis (biased variance), padding-safe:
        # padded hidden columns are exactly 0, and the divisor is the true H.
        mean = jnp.sum(h, axis=-1, keepdims=True) * inv_h
        msq = jnp.sum(h * h, axis=-1, keepdims=True) * inv_h
        var = jnp.maximum(msq - mean * mean, 0.0)
        h = (h - mean) * jax.lax.rsqrt(var + eps) * gamma + beta

        # Linear 2: cast activations to the weight dtype so the MXU runs native.
        out = jnp.dot(h.astype(w2_ref.dtype), w2_ref[...],
                      preferred_element_type=jnp.float32)
        out = out + b2

        o_ref[lo:hi, :] = out.astype(o_ref.dtype)


# --------------------------- sizing helpers ---------------------------------


def _round_up(n, m):
    return ((n + m - 1) // m) * m


def _physical_vmem_bytes():
    # Per-generation VMEM (v5e/v6e: 128 MiB, v7x: 64 MiB); conservative fallback.
    try:
        return int(pltpu.get_tpu_info().vmem_capacity_bytes)
    except Exception:
        return 64 * 1024 * 1024


def _sublane_multiple(act_bytes):
    return {4: 8, 2: 16, 1: 32}.get(act_bytes, 8)


def _vmem_estimate(tile_b, IN, Hp, OUTp, act_bytes, w_bytes, single_buffer_consts):
    wbuf = 1 if single_buffer_consts else 2
    weights = wbuf * (IN * Hp + Hp * OUTp) * w_bytes
    vectors = wbuf * (3 * Hp + OUTp) * w_bytes
    acts = 2 * tile_b * (IN + OUTp) * act_bytes          # double-buffered x / out tiles
    inter = 3 * tile_b * Hp * 4                          # f32 hidden temporaries
    return 2 * (weights + vectors + acts + inter)        # 2x safety margin


def _vmem_limit_bytes(tile_b, IN, Hp, OUTp, act_bytes, w_bytes, single_buffer_consts):
    est = _vmem_estimate(tile_b, IN, Hp, OUTp, act_bytes, w_bytes,
                         single_buffer_consts)
    cap = _physical_vmem_bytes()
    return int(min(cap - 2 * 1024 * 1024, max(32 * 1024 * 1024, est)))


def _default_tile_b(B, IN, Hp, OUTp, act_bytes, w_bytes, single_buffer_consts):
    """Largest dtype-aligned tile that fits VMEM; prefer >=4 grid steps (v7x)."""
    sub = _sublane_multiple(act_bytes)
    budget = _physical_vmem_bytes() - 4 * 1024 * 1024
    cands = [t for t in (2048, 1024, 512, 256, 128, 64, 32, 16, 8)
             if t % sub == 0 and t <= B and B % t == 0]
    for min_steps in (4, 2, 1):
        for t in cands:  # descending
            if B // t >= min_steps and _vmem_estimate(
                    t, IN, Hp, OUTp, act_bytes, w_bytes,
                    single_buffer_consts) <= budget:
                return t
    return B


def _pad_cols(v, cols):
    pad = cols - v.shape[-1]
    return jnp.pad(v, ((0, 0), (0, pad))) if pad else v


def _pad_mat(w, rows, cols):
    pr, pc = rows - w.shape[0], cols - w.shape[1]
    return jnp.pad(w, ((0, pr), (0, pc))) if (pr or pc) else w


def _const_spec(shape, single_buffer):
    """Constant-index operand spec; single-buffered when the build supports it."""
    if single_buffer and hasattr(pl, "Buffered"):
        try:
            return pl.BlockSpec(shape, lambda i: (0, 0),
                                pipeline_mode=pl.Buffered(buffer_count=1))
        except Exception:
            pass
    return pl.BlockSpec(shape, lambda i: (0, 0))


# ------------------------------ wrapper --------------------------------------


def _mlp_pallas_impl(x, params, *, tile_b, eps, single_buffer_consts):
    B, IN = x.shape
    H = params["w1"].shape[1]
    OUT = params["w2"].shape[1]
    Hp = _round_up(H, 128)
    OUTp = _round_up(OUT, 128)

    act_bytes = jnp.dtype(x.dtype).itemsize
    w_bytes = jnp.dtype(params["w1"].dtype).itemsize

    if tile_b is None:
        tile_b = _default_tile_b(B, IN, Hp, OUTp, act_bytes, w_bytes,
                                 single_buffer_consts)
    assert B % tile_b == 0, "pad the batch to a multiple of tile_b on the wrapper side"

    sub = _sublane_multiple(act_bytes)
    n_sub = 2 if (tile_b % (2 * sub) == 0) else 1

    # Zero-pad to lane-dense (multiple-of-128) H / OUT. Zeros keep the math
    # exact (see kernel LayerNorm comment); padded output columns are sliced off.
    w1 = _pad_mat(params["w1"], IN, Hp)
    w2 = _pad_mat(params["w2"], Hp, OUTp)
    b1 = _pad_cols(params["b1"].reshape(1, -1), Hp)
    gamma = _pad_cols(params["gamma"].reshape(1, -1), Hp)
    beta = _pad_cols(params["beta"].reshape(1, -1), Hp)
    b2 = _pad_cols(params["b2"].reshape(1, -1), OUTp)

    grid = (B // tile_b,)
    kernel = functools.partial(_mlp_kernel, eps=float(eps),
                               inv_h=1.0 / float(H), n_sub=n_sub)

    vmem_limit = _vmem_limit_bytes(tile_b, IN, Hp, OUTp, act_bytes, w_bytes,
                                   single_buffer_consts)

    param_bytes = (w1.size + w2.size + b1.size + gamma.size + beta.size + b2.size) * w_bytes
    cost = pl.CostEstimate(
        flops=2 * B * (IN * Hp + Hp * OUTp),
        transcendentals=B * Hp,
        bytes_accessed=int(x.size * act_bytes + B * OUTp * act_bytes + param_bytes),
    )

    out = pl.pallas_call(
        kernel,
        out_shape=jax.ShapeDtypeStruct((B, OUTp), x.dtype),
        grid_spec=pltpu.PrefetchScalarGridSpec(
            num_scalar_prefetch=0,
            grid=grid,
            in_specs=[
                pl.BlockSpec((tile_b, IN), lambda i: (i, 0)),      # x tile (streamed)
                _const_spec((IN, Hp), single_buffer_consts),       # w1 (resident)
                _const_spec((1, Hp), single_buffer_consts),        # b1
                _const_spec((1, Hp), single_buffer_consts),        # gamma
                _const_spec((1, Hp), single_buffer_consts),        # beta
                _const_spec((Hp, OUTp), single_buffer_consts),     # w2 (resident)
                _const_spec((1, OUTp), single_buffer_consts),      # b2
            ],
            out_specs=pl.BlockSpec((tile_b, OUTp), lambda i: (i, 0)),
        ),
        compiler_params=pltpu.CompilerParams(
            dimension_semantics=("parallel",),
            vmem_limit_bytes=vmem_limit),
        cost_estimate=cost,
    )(x, w1, b1, gamma, beta, w2, b2)

    return out[:, :OUT] if OUTp != OUT else out


def mlp_pallas(x, params, *, tile_b=None, eps=1e-5):
    """x: (B, input_size). params: dict of w1,b1,gamma,beta,w2,b2 (w's as (in,out))."""
    try:
        return _mlp_pallas_impl(x, params, tile_b=tile_b, eps=eps,
                                single_buffer_consts=True)
    except Exception:
        # Fallback: this JAX build does not accept pipeline_mode=pl.Buffered(1)
        # on top-level BlockSpecs; rerun with default double-buffered constants.
        return _mlp_pallas_impl(x, params, tile_b=tile_b, eps=eps,
                                single_buffer_consts=False)


# --------------------------- params / reference ------------------------------


def init_params(key, input_size, output_size, hidden_size=None, dtype=jnp.float32):
    """Parameter shapes mirroring the PyTorch module.

    PyTorch nn.Linear stores weight as (out, in); we keep the transpose (in, out)
    so the kernel does row-major matmuls directly on the MXU. For best MXU
    throughput / VMEM footprint, prefer dtype=jnp.bfloat16 in production.
    """
    if hidden_size is None:
        hidden_size = (input_size + output_size) // 2
    k1, k2, k3, k4 = jax.random.split(key, 4)
    s1 = 1.0 / float(input_size) ** 0.5
    s2 = 1.0 / float(hidden_size) ** 0.5
    params = {
        "w1": jax.random.uniform(k1, (input_size, hidden_size), jnp.float32, -s1, s1),
        "b1": jax.random.uniform(k2, (hidden_size,), jnp.float32, -s1, s1),
        "gamma": jnp.ones((hidden_size,), jnp.float32),
        "beta": jnp.zeros((hidden_size,), jnp.float32),
        "w2": jax.random.uniform(k3, (hidden_size, output_size), jnp.float32, -s2, s2),
        "b2": jax.random.uniform(k4, (output_size,), jnp.float32, -s2, s2),
    }
    params = {k: v.astype(dtype) for k, v in params.items()}
    return params, hidden_size


def mlp_reference(x, params, eps=1e-5):
    """Pure-JAX f32 reference matching the PyTorch forward."""
    f32 = jnp.float32
    x = x.astype(f32)
    p = {k: v.astype(f32) for k, v in params.items()}
    h = x @ p["w1"] + p["b1"]
    h = jax.nn.gelu(h, approximate=False)
    mean = jnp.mean(h, axis=-1, keepdims=True)
    var = jnp.mean((h - mean) ** 2, axis=-1, keepdims=True)
    h = (h - mean) * jax.lax.rsqrt(var + eps) * p["gamma"] + p["beta"]
    return h @ p["w2"] + p["b2"]


# --------------------------------- demo ---------------------------------------


if __name__ == "__main__":
    key = jax.random.PRNGKey(0)
    kp, kx = jax.random.split(key)

    batch = 256
    input_size = 32
    output_size = 16

    params, hidden_size = init_params(kp, input_size, output_size)   # hidden = 24
    x = jax.random.normal(kx, (batch, input_size), jnp.float32)

    # ---- f32 path (tile_b auto-picked: dtype-aware, >=4 grid steps) ----
    out = jax.block_until_ready(mlp_pallas(x, params))
    ref = mlp_reference(x, params)
    assert out.shape == (batch, output_size)
    err = float(jnp.max(jnp.abs(out - ref)))
    assert jnp.allclose(out, ref, atol=2e-2, rtol=2e-2), f"f32 max abs err = {err}"

    # ---- bf16 path: native bf16 operands on the MXU, f32 accumulate / LN math ----
    params_bf = {k: v.astype(jnp.bfloat16) for k, v in params.items()}
    x_bf = x.astype(jnp.bfloat16)
    out_bf = jax.block_until_ready(mlp_pallas(x_bf, params_bf))
    ref_bf = mlp_reference(x_bf, params_bf)
    err_bf = float(jnp.max(jnp.abs(out_bf.astype(jnp.float32) - ref_bf)))
    assert out_bf.shape == (batch, output_size)
    assert err_bf < 0.1, f"bf16 max abs err = {err_bf}"

    print("KERNEL_OK")
</pallas_src>

<mosaic_0001>
module attributes {stable_mosaic.version = 11 : i64} {
  func.func @_mlp_kernel(%arg0: i32, %arg1: memref<64x32xf32, #tpu.memory_space<vmem>>, %arg2: memref<32x128xf32, #tpu.memory_space<vmem>>, %arg3: memref<1x128xf32, #tpu.memory_space<vmem>>, %arg4: memref<1x128xf32, #tpu.memory_space<vmem>>, %arg5: memref<1x128xf32, #tpu.memory_space<vmem>>, %arg6: memref<128x128xf32, #tpu.memory_space<vmem>>, %arg7: memref<1x128xf32, #tpu.memory_space<vmem>>, %arg8: memref<64x128xf32, #tpu.memory_space<vmem>>) attributes {dimension_semantics = [#tpu.dimension_semantics<parallel>], iteration_bounds = array<i64: 4>, scalar_prefetch = 0 : i64, scratch_operands = 0 : i64, tpu.core_type = #tpu.core_type<tc>, window_params = [{transform_indices = @transform_0, window_bounds = array<i64: 64, 32>}, {pipeline_mode = #tpu.pipeline_mode<synchronous>, transform_indices = @transform_1, window_bounds = array<i64: 32, 128>}, {pipeline_mode = #tpu.pipeline_mode<synchronous>, transform_indices = @transform_2, window_bounds = array<i64: 1, 128>}, {pipeline_mode = #tpu.pipeline_mode<synchronous>, transform_indices = @transform_3, window_bounds = array<i64: 1, 128>}, {pipeline_mode = #tpu.pipeline_mode<synchronous>, transform_indices = @transform_4, window_bounds = array<i64: 1, 128>}, {pipeline_mode = #tpu.pipeline_mode<synchronous>, transform_indices = @transform_5, window_bounds = array<i64: 128, 128>}, {pipeline_mode = #tpu.pipeline_mode<synchronous>, transform_indices = @transform_6, window_bounds = array<i64: 1, 128>}, {transform_indices = @transform_7, window_bounds = array<i64: 64, 128>}]} {
    %c0 = arith.constant 0 : index
    %c0_0 = arith.constant 0 : index
    %0 = vector.load %arg3[%c0, %c0_0] : memref<1x128xf32, #tpu.memory_space<vmem>>, vector<1x128xf32>
    %c0_1 = arith.constant 0 : index
    %c0_2 = arith.constant 0 : index
    %1 = vector.load %arg4[%c0_1, %c0_2] : memref<1x128xf32, #tpu.memory_space<vmem>>, vector<1x128xf32>
    %c0_3 = arith.constant 0 : index
    %c0_4 = arith.constant 0 : index
    %2 = vector.load %arg5[%c0_3, %c0_4] : memref<1x128xf32, #tpu.memory_space<vmem>>, vector<1x128xf32>
    %c0_5 = arith.constant 0 : index
    %c0_6 = arith.constant 0 : index
    %3 = vector.load %arg7[%c0_5, %c0_6] : memref<1x128xf32, #tpu.memory_space<vmem>>, vector<1x128xf32>
    %c0_7 = arith.constant 0 : index
    %c0_8 = arith.constant 0 : index
    %4 = vector.load %arg1[%c0_7, %c0_8] : memref<64x32xf32, #tpu.memory_space<vmem>>, vector<32x32xf32>
    %c0_9 = arith.constant 0 : index
    %c0_10 = arith.constant 0 : index
    %5 = vector.load %arg2[%c0_9, %c0_10] : memref<32x128xf32, #tpu.memory_space<vmem>>, vector<32x128xf32>
    %cst = arith.constant dense<0.000000e+00> : vector<32x128xf32>
    %6 = tpu.matmul %4, %5, %cst {dimension_numbers = #tpu.dot_dimension_numbers<[1], [0], [0], [1], [0, 0, 1, 1], [], []>} : vector<32x32xf32>, vector<32x128xf32>, vector<32x128xf32> -> vector<32x128xf32>
    %7 = vector.broadcast %0 : vector<1x128xf32> to vector<32x128xf32>
    %8 = arith.addf %6, %7 : vector<32x128xf32>
    %cst_11 = arith.constant 5.000000e-01 : f32
    %9 = vector.broadcast %cst_11 : f32 to vector<32x128xf32>
    %10 = arith.mulf %9, %8 : vector<32x128xf32>
    %cst_12 = arith.constant 0.707106769 : f32
    %11 = vector.broadcast %cst_12 : f32 to vector<32x128xf32>
    %12 = arith.mulf %8, %11 : vector<32x128xf32>
    %13 = math.erf %12 : vector<32x128xf32>
    %cst_13 = arith.constant 1.000000e+00 : f32
    %14 = vector.broadcast %cst_13 : f32 to vector<32x128xf32>
    %15 = arith.addf %14, %13 : vector<32x128xf32>
    %16 = arith.mulf %10, %15 : vector<32x128xf32>
    %cst_14 = arith.constant dense<0.000000e+00> : vector<32xf32>
    %17 = vector.multi_reduction <add>, %16, %cst_14 [1] : vector<32x128xf32> to vector<32xf32>
    %18 = vector.shape_cast %17 : vector<32xf32> to vector<32x1xf32>
    %cst_15 = arith.constant 0.0416666679 : f32
    %19 = vector.broadcast %cst_15 : f32 to vector<32x1xf32>
    %20 = arith.mulf %18, %19 : vector<32x1xf32>
    %21 = arith.mulf %16, %16 : vector<32x128xf32>
    %cst_16 = arith.constant dense<0.000000e+00> : vector<32xf32>
    %22 = vector.multi_reduction <add>, %21, %cst_16 [1] : vector<32x128xf32> to vector<32xf32>
    %23 = vector.shape_cast %22 : vector<32xf32> to vector<32x1xf32>
    %cst_17 = arith.constant 0.0416666679 : f32
    %24 = vector.broadcast %cst_17 : f32 to vector<32x1xf32>
    %25 = arith.mulf %23, %24 : vector<32x1xf32>
    %26 = arith.mulf %20, %20 : vector<32x1xf32>
    %27 = arith.subf %25, %26 : vector<32x1xf32>
    %cst_18 = arith.constant 0.000000e+00 : f32
    %28 = vector.broadcast %cst_18 : f32 to vector<32x1xf32>
    %29 = arith.maximumf %27, %28 : vector<32x1xf32>
    %30 = vector.broadcast %20 : vector<32x1xf32> to vector<32x128xf32>
    %31 = arith.subf %16, %30 : vector<32x128xf32>
    %cst_19 = arith.constant 9.99999974E-6 : f32
    %32 = vector.broadcast %cst_19 : f32 to vector<32x1xf32>
    %33 = arith.addf %29, %32 : vector<32x1xf32>
    %34 = math.rsqrt %33 : vector<32x1xf32>
    %35 = vector.broadcast %34 : vector<32x1xf32> to vector<32x128xf32>
    %36 = arith.mulf %31, %35 : vector<32x128xf32>
    %37 = vector.broadcast %1 : vector<1x128xf32> to vector<32x128xf32>
    %38 = arith.mulf %36, %37 : vector<32x128xf32>
    %39 = vector.broadcast %2 : vector<1x128xf32> to vector<32x128xf32>
    %40 = arith.addf %38, %39 : vector<32x128xf32>
    %c0_20 = arith.constant 0 : index
    %c0_21 = arith.constant 0 : index
    %41 = vector.load %arg6[%c0_20, %c0_21] : memref<128x128xf32, #tpu.memory_space<vmem>>, vector<128x128xf32>
    %cst_22 = arith.constant dense<0.000000e+00> : vector<32x128xf32>
    %42 = tpu.matmul %40, %41, %cst_22 {dimension_numbers = #tpu.dot_dimension_numbers<[1], [0], [0], [1], [0, 0, 1, 1], [], []>} : vector<32x128xf32>, vector<128x128xf32>, vector<32x128xf32> -> vector<32x128xf32>
    %43 = vector.broadcast %3 : vector<1x128xf32> to vector<32x128xf32>
    %44 = arith.addf %42, %43 : vector<32x128xf32>
    %c0_23 = arith.constant 0 : index
    %c0_24 = arith.constant 0 : index
    %45 = vector.load %arg8[%c0_23, %c0_24] : memref<64x128xf32, #tpu.memory_space<vmem>>, vector<32x128xf32>
    tpu.vector_store %arg8[%c0_23, %c0_24], %44 {strides = array<i32>} : memref<64x128xf32, #tpu.memory_space<vmem>>, vector<32x128xf32>,
    %c32 = arith.constant 32 : index
    %c0_25 = arith.constant 0 : index
    %46 = vector.load %arg1[%c32, %c0_25] : memref<64x32xf32, #tpu.memory_space<vmem>>, vector<32x32xf32>
    %c0_26 = arith.constant 0 : index
    %c0_27 = arith.constant 0 : index
    %47 = vector.load %arg2[%c0_26, %c0_27] : memref<32x128xf32, #tpu.memory_space<vmem>>, vector<32x128xf32>
    %cst_28 = arith.constant dense<0.000000e+00> : vector<32x128xf32>
    %48 = tpu.matmul %46, %47, %cst_28 {dimension_numbers = #tpu.dot_dimension_numbers<[1], [0], [0], [1], [0, 0, 1, 1], [], []>} : vector<32x32xf32>, vector<32x128xf32>, vector<32x128xf32> -> vector<32x128xf32>
    %49 = vector.broadcast %0 : vector<1x128xf32> to vector<32x128xf32>
    %50 = arith.addf %48, %49 : vector<32x128xf32>
    %cst_29 = arith.constant 5.000000e-01 : f32
    %51 = vector.broadcast %cst_29 : f32 to vector<32x128xf32>
    %52 = arith.mulf %51, %50 : vector<32x128xf32>
    %cst_30 = arith.constant 0.707106769 : f32
    %53 = vector.broadcast %cst_30 : f32 to vector<32x128xf32>
    %54 = arith.mulf %50, %53 : vector<32x128xf32>
    %55 = math.erf %54 : vector<32x128xf32>
    %cst_31 = arith.constant 1.000000e+00 : f32
    %56 = vector.broadcast %cst_31 : f32 to vector<32x128xf32>
    %57 = arith.addf %56, %55 : vector<32x128xf32>
    %58 = arith.mulf %52, %57 : vector<32x128xf32>
    %cst_32 = arith.constant dense<0.000000e+00> : vector<32xf32>
    %59 = vector.multi_reduction <add>, %58, %cst_32 [1] : vector<32x128xf32> to vector<32xf32>
    %60 = vector.shape_cast %59 : vector<32xf32> to vector<32x1xf32>
    %cst_33 = arith.constant 0.0416666679 : f32
    %61 = vector.broadcast %cst_33 : f32 to vector<32x1xf32>
    %62 = arith.mulf %60, %61 : vector<32x1xf32>
    %63 = arith.mulf %58, %58 : vector<32x128xf32>
    %cst_34 = arith.constant dense<0.000000e+00> : vector<32xf32>
    %64 = vector.multi_reduction <add>, %63, %cst_34 [1] : vector<32x128xf32> to vector<32xf32>
    %65 = vector.shape_cast %64 : vector<32xf32> to vector<32x1xf32>
    %cst_35 = arith.constant 0.0416666679 : f32
    %66 = vector.broadcast %cst_35 : f32 to vector<32x1xf32>
    %67 = arith.mulf %65, %66 : vector<32x1xf32>
    %68 = arith.mulf %62, %62 : vector<32x1xf32>
    %69 = arith.subf %67, %68 : vector<32x1xf32>
    %cst_36 = arith.constant 0.000000e+00 : f32
    %70 = vector.broadcast %cst_36 : f32 to vector<32x1xf32>
    %71 = arith.maximumf %69, %70 : vector<32x1xf32>
    %72 = vector.broadcast %62 : vector<32x1xf32> to vector<32x128xf32>
    %73 = arith.subf %58, %72 : vector<32x128xf32>
    %cst_37 = arith.constant 9.99999974E-6 : f32
    %74 = vector.broadcast %cst_37 : f32 to vector<32x1xf32>
    %75 = arith.addf %71, %74 : vector<32x1xf32>
    %76 = math.rsqrt %75 : vector<32x1xf32>
    %77 = vector.broadcast %76 : vector<32x1xf32> to vector<32x128xf32>
    %78 = arith.mulf %73, %77 : vector<32x128xf32>
    %79 = vector.broadcast %1 : vector<1x128xf32> to vector<32x128xf32>
    %80 = arith.mulf %78, %79 : vector<32x128xf32>
    %81 = vector.broadcast %2 : vector<1x128xf32> to vector<32x128xf32>
    %82 = arith.addf %80, %81 : vector<32x128xf32>
    %c0_38 = arith.constant 0 : index
    %c0_39 = arith.constant 0 : index
    %83 = vector.load %arg6[%c0_38, %c0_39] : memref<128x128xf32, #tpu.memory_space<vmem>>, vector<128x128xf32>
    %cst_40 = arith.constant dense<0.000000e+00> : vector<32x128xf32>
    %84 = tpu.matmul %82, %83, %cst_40 {dimension_numbers = #tpu.dot_dimension_numbers<[1], [0], [0], [1], [0, 0, 1, 1], [], []>} : vector<32x128xf32>, vector<128x128xf32>, vector<32x128xf32> -> vector<32x128xf32>
    %85 = vector.broadcast %3 : vector<1x128xf32> to vector<32x128xf32>
    %86 = arith.addf %84, %85 : vector<32x128xf32>
    %c32_41 = arith.constant 32 : index
    %c0_42 = arith.constant 0 : index
    %87 = vector.load %arg8[%c32_41, %c0_42] : memref<64x128xf32, #tpu.memory_space<vmem>>, vector<32x128xf32>
    tpu.vector_store %arg8[%c32_41, %c0_42], %86 {strides = array<i32>} : memref<64x128xf32, #tpu.memory_space<vmem>>, vector<32x128xf32>,
    return
  }
  func.func @transform_0(%arg0: i32) -> (i32, i32) {
    %c0_i32 = arith.constant 0 : i32
    %c0_i32_0 = arith.constant 0 : i32
    return %arg0, %c0_i32 : i32, i32
  }
  func.func @transform_1(%arg0: i32) -> (i32, i32) {
    %c0_i32 = arith.constant 0 : i32
    %c0_i32_0 = arith.constant 0 : i32
    %c0_i32_1 = arith.constant 0 : i32
    return %c0_i32, %c0_i32_0 : i32, i32
  }
  func.func @transform_2(%arg0: i32) -> (i32, i32) {
    %c0_i32 = arith.constant 0 : i32
    %c0_i32_0 = arith.constant 0 : i32
    %c0_i32_1 = arith.constant 0 : i32
    return %c0_i32, %c0_i32_0 : i32, i32
  }
  func.func @transform_3(%arg0: i32) -> (i32, i32) {
    %c0_i32 = arith.constant 0 : i32
    %c0_i32_0 = arith.constant 0 : i32
    %c0_i32_1 = arith.constant 0 : i32
    return %c0_i32, %c0_i32_0 : i32, i32
  }
  func.func @transform_4(%arg0: i32) -> (i32, i32) {
    %c0_i32 = arith.constant 0 : i32
    %c0_i32_0 = arith.constant 0 : i32
    %c0_i32_1 = arith.constant 0 : i32
    return %c0_i32, %c0_i32_0 : i32, i32
  }
  func.func @transform_5(%arg0: i32) -> (i32, i32) {
    %c0_i32 = arith.constant 0 : i32
    %c0_i32_0 = arith.constant 0 : i32
    %c0_i32_1 = arith.constant 0 : i32
    return %c0_i32, %c0_i32_0 : i32, i32
  }
  func.func @transform_6(%arg0: i32) -> (i32, i32) {
    %c0_i32 = arith.constant 0 : i32
    %c0_i32_0 = arith.constant 0 : i32
    %c0_i32_1 = arith.constant 0 : i32
    return %c0_i32, %c0_i32_0 : i32, i32
  }
  func.func @transform_7(%arg0: i32) -> (i32, i32) {
    %c0_i32 = arith.constant 0 : i32
    %c0_i32_0 = arith.constant 0 : i32
    return %arg0, %c0_i32 : i32, i32
  }
}

module attributes {stable_mosaic.version = 11 : i64} {
  func.func @_mlp_kernel(%arg0: i32, %arg1: memref<64x32xf32, #tpu.memory_space<vmem>>, %arg2: memref<32x128xf32, #tpu.memory_space<vmem>>, %arg3: memref<1x128xf32, #tpu.memory_space<vmem>>, %arg4: memref<1x128xf32, #tpu.memory_space<vmem>>, %arg5: memref<1x128xf32, #tpu.memory_space<vmem>>, %arg6: memref<128x128xf32, #tpu.memory_space<vmem>>, %arg7: memref<1x128xf32, #tpu.memory_space<vmem>>, %arg8: memref<64x128xf32, #tpu.memory_space<vmem>>) attributes {dimension_semantics = [#tpu.dimension_semantics<parallel>], iteration_bounds = array<i64: 4>, scalar_prefetch = 0 : i64, scratch_operands = 0 : i64, tpu.core_type = #tpu.core_type<tc>, window_params = [{transform_indices = @transform_0, window_bounds = array<i64: 64, 32>}, {pipeline_mode = #tpu.pipeline_mode<synchronous>, transform_indices = @transform_1, window_bounds = array<i64: 32, 128>}, {pipeline_mode = #tpu.pipeline_mode<synchronous>, transform_indices = @transform_2, window_bounds = array<i64: 1, 128>}, {pipeline_mode = #tpu.pipeline_mode<synchronous>, transform_indices = @transform_3, window_bounds = array<i64: 1, 128>}, {pipeline_mode = #tpu.pipeline_mode<synchronous>, transform_indices = @transform_4, window_bounds = array<i64: 1, 128>}, {pipeline_mode = #tpu.pipeline_mode<synchronous>, transform_indices = @transform_5, window_bounds = array<i64: 128, 128>}, {pipeline_mode = #tpu.pipeline_mode<synchronous>, transform_indices = @transform_6, window_bounds = array<i64: 1, 128>}, {transform_indices = @transform_7, window_bounds = array<i64: 64, 128>}]} {
    %c0 = arith.constant 0 : index
    %c0_0 = arith.constant 0 : index
    %0 = vector.load %arg3[%c0, %c0_0] : memref<1x128xf32, #tpu.memory_space<vmem>>, vector<1x128xf32>
    %c0_1 = arith.constant 0 : index
    %c0_2 = arith.constant 0 : index
    %1 = vector.load %arg4[%c0_1, %c0_2] : memref<1x128xf32, #tpu.memory_space<vmem>>, vector<1x128xf32>
    %c0_3 = arith.constant 0 : index
    %c0_4 = arith.constant 0 : index
    %2 = vector.load %arg5[%c0_3, %c0_4] : memref<1x128xf32, #tpu.memory_space<vmem>>, vector<1x128xf32>
    %c0_5 = arith.constant 0 : index
    %c0_6 = arith.constant 0 : index
    %3 = vector.load %arg7[%c0_5, %c0_6] : memref<1x128xf32, #tpu.memory_space<vmem>>, vector<1x128xf32>
    %c0_7 = arith.constant 0 : index
    %c0_8 = arith.constant 0 : index
    %4 = vector.load %arg1[%c0_7, %c0_8] : memref<64x32xf32, #tpu.memory_space<vmem>>, vector<32x32xf32>
    %c0_9 = arith.constant 0 : index
    %c0_10 = arith.constant 0 : index
    %5 = vector.load %arg2[%c0_9, %c0_10] : memref<32x128xf32, #tpu.memory_space<vmem>>, vector<32x128xf32>
    %cst = arith.constant dense<0.000000e+00> : vector<32x128xf32>
    %6 = tpu.matmul %4, %5, %cst {dimension_numbers = #tpu.dot_dimension_numbers<[1], [0], [0], [1], [0, 0, 1, 1], [], []>} : vector<32x32xf32>, vector<32x128xf32>, vector<32x128xf32> -> vector<32x128xf32>
    %7 = vector.broadcast %0 : vector<1x128xf32> to vector<32x128xf32>
    %8 = arith.addf %6, %7 : vector<32x128xf32>
    %cst_11 = arith.constant 5.000000e-01 : f32
    %9 = vector.broadcast %cst_11 : f32 to vector<32x128xf32>
    %10 = arith.mulf %9, %8 : vector<32x128xf32>
    %cst_12 = arith.constant 0.707106769 : f32
    %11 = vector.broadcast %cst_12 : f32 to vector<32x128xf32>
    %12 = arith.mulf %8, %11 : vector<32x128xf32>
    %13 = math.erf %12 : vector<32x128xf32>
    %cst_13 = arith.constant 1.000000e+00 : f32
    %14 = vector.broadcast %cst_13 : f32 to vector<32x128xf32>
    %15 = arith.addf %14, %13 : vector<32x128xf32>
    %16 = arith.mulf %10, %15 : vector<32x128xf32>
    %cst_14 = arith.constant dense<0.000000e+00> : vector<32xf32>
    %17 = vector.multi_reduction <add>, %16, %cst_14 [1] : vector<32x128xf32> to vector<32xf32>
    %18 = vector.shape_cast %17 : vector<32xf32> to vector<32x1xf32>
    %cst_15 = arith.constant 0.0416666679 : f32
    %19 = vector.broadcast %cst_15 : f32 to vector<32x1xf32>
    %20 = arith.mulf %18, %19 : vector<32x1xf32>
    %21 = arith.mulf %16, %16 : vector<32x128xf32>
    %cst_16 = arith.constant dense<0.000000e+00> : vector<32xf32>
    %22 = vector.multi_reduction <add>, %21, %cst_16 [1] : vector<32x128xf32> to vector<32xf32>
    %23 = vector.shape_cast %22 : vector<32xf32> to vector<32x1xf32>
    %cst_17 = arith.constant 0.0416666679 : f32
    %24 = vector.broadcast %cst_17 : f32 to vector<32x1xf32>
    %25 = arith.mulf %23, %24 : vector<32x1xf32>
    %26 = arith.mulf %20, %20 : vector<32x1xf32>
    %27 = arith.subf %25, %26 : vector<32x1xf32>
    %cst_18 = arith.constant 0.000000e+00 : f32
    %28 = vector.broadcast %cst_18 : f32 to vector<32x1xf32>
    %29 = arith.maximumf %27, %28 : vector<32x1xf32>
    %30 = vector.broadcast %20 : vector<32x1xf32> to vector<32x128xf32>
    %31 = arith.subf %16, %30 : vector<32x128xf32>
    %cst_19 = arith.constant 9.99999974E-6 : f32
    %32 = vector.broadcast %cst_19 : f32 to vector<32x1xf32>
    %33 = arith.addf %29, %32 : vector<32x1xf32>
    %34 = math.rsqrt %33 : vector<32x1xf32>
    %35 = vector.broadcast %34 : vector<32x1xf32> to vector<32x128xf32>
    %36 = arith.mulf %31, %35 : vector<32x128xf32>
    %37 = vector.broadcast %1 : vector<1x128xf32> to vector<32x128xf32>
    %38 = arith.mulf %36, %37 : vector<32x128xf32>
    %39 = vector.broadcast %2 : vector<1x128xf32> to vector<32x128xf32>
    %40 = arith.addf %38, %39 : vector<32x128xf32>
    %c0_20 = arith.constant 0 : index
    %c0_21 = arith.constant 0 : index
    %41 = vector.load %arg6[%c0_20, %c0_21] : memref<128x128xf32, #tpu.memory_space<vmem>>, vector<128x128xf32>
    %cst_22 = arith.constant dense<0.000000e+00> : vector<32x128xf32>
    %42 = tpu.matmul %40, %41, %cst_22 {dimension_numbers = #tpu.dot_dimension_numbers<[1], [0], [0], [1], [0, 0, 1, 1], [], []>} : vector<32x128xf32>, vector<128x128xf32>, vector<32x128xf32> -> vector<32x128xf32>
    %43 = vector.broadcast %3 : vector<1x128xf32> to vector<32x128xf32>
    %44 = arith.addf %42, %43 : vector<32x128xf32>
    %c0_23 = arith.constant 0 : index
    %c0_24 = arith.constant 0 : index
    %45 = vector.load %arg8[%c0_23, %c0_24] : memref<64x128xf32, #tpu.memory_space<vmem>>, vector<32x128xf32>
    tpu.vector_store %arg8[%c0_23, %c0_24], %44 {strides = array<i32>} : memref<64x128xf32, #tpu.memory_space<vmem>>, vector<32x128xf32>,
    %c32 = arith.constant 32 : index
    %c0_25 = arith.constant 0 : index
    %46 = vector.load %arg1[%c32, %c0_25] : memref<64x32xf32, #tpu.memory_space<vmem>>, vector<32x32xf32>
    %c0_26 = arith.constant 0 : index
    %c0_27 = arith.constant 0 : index
    %47 = vector.load %arg2[%c0_26, %c0_27] : memref<32x128xf32, #tpu.memory_space<vmem>>, vector<32x128xf32>
    %cst_28 = arith.constant dense<0.000000e+00> : vector<32x128xf32>
    %48 = tpu.matmul %46, %47, %cst_28 {dimension_numbers = #tpu.dot_dimension_numbers<[1], [0], [0], [1], [0, 0, 1, 1], [], []>} : vector<32x32xf32>, vector<32x128xf32>, vector<32x128xf32> -> vector<32x128xf32>
    %49 = vector.broadcast %0 : vector<1x128xf32> to vector<32x128xf32>
    %50 = arith.addf %48, %49 : vector<32x128xf32>
    %cst_29 = arith.constant 5.000000e-01 : f32
    %51 = vector.broadcast %cst_29 : f32 to vector<32x128xf32>
    %52 = arith.mulf %51, %50 : vector<32x128xf32>
    %cst_30 = arith.constant 0.707106769 : f32
    %53 = vector.broadcast %cst_30 : f32 to vector<32x128xf32>
    %54 = arith.mulf %50, %53 : vector<32x128xf32>
    %55 = math.erf %54 : vector<32x128xf32>
    %cst_31 = arith.constant 1.000000e+00 : f32
    %56 = vector.broadcast %cst_31 : f32 to vector<32x128xf32>
    %57 = arith.addf %56, %55 : vector<32x128xf32>
    %58 = arith.mulf %52, %57 : vector<32x128xf32>
    %cst_32 = arith.constant dense<0.000000e+00> : vector<32xf32>
    %59 = vector.multi_reduction <add>, %58, %cst_32 [1] : vector<32x128xf32> to vector<32xf32>
    %60 = vector.shape_cast %59 : vector<32xf32> to vector<32x1xf32>
    %cst_33 = arith.constant 0.0416666679 : f32
    %61 = vector.broadcast %cst_33 : f32 to vector<32x1xf32>
    %62 = arith.mulf %60, %61 : vector<32x1xf32>
    %63 = arith.mulf %58, %58 : vector<32x128xf32>
    %cst_34 = arith.constant dense<0.000000e+00> : vector<32xf32>
    %64 = vector.multi_reduction <add>, %63, %cst_34 [1] : vector<32x128xf32> to vector<32xf32>
    %65 = vector.shape_cast %64 : vector<32xf32> to vector<32x1xf32>
    %cst_35 = arith.constant 0.0416666679 : f32
    %66 = vector.broadcast %cst_35 : f32 to vector<32x1xf32>
    %67 = arith.mulf %65, %66 : vector<32x1xf32>
    %68 = arith.mulf %62, %62 : vector<32x1xf32>
    %69 = arith.subf %67, %68 : vector<32x1xf32>
    %cst_36 = arith.constant 0.000000e+00 : f32
    %70 = vector.broadcast %cst_36 : f32 to vector<32x1xf32>
    %71 = arith.maximumf %69, %70 : vector<32x1xf32>
    %72 = vector.broadcast %62 : vector<32x1xf32> to vector<32x128xf32>
    %73 = arith.subf %58, %72 : vector<32x128xf32>
    %cst_37 = arith.constant 9.99999974E-6 : f32
    %74 = vector.broadcast %cst_37 : f32 to vector<32x1xf32>
    %75 = arith.addf %71, %74 : vector<32x1xf32>
    %76 = math.rsqrt %75 : vector<32x1xf32>
    %77 = vector.broadcast %76 : vector<32x1xf32> to vector<32x128xf32>
    %78 = arith.mulf %73, %77 : vector<32x128xf32>
    %79 = vector.broadcast %1 : vector<1x128xf32> to vector<32x128xf32>
    %80 = arith.mulf %78, %79 : vector<32x128xf32>
    %81 = vector.broadcast %2 : vector<1x128xf32> to vector<32x128xf32>
    %82 = arith.addf %80, %81 : vector<32x128xf32>
    %c0_38 = arith.constant 0 : index
    %c0_39 = arith.constant 0 : index
    %83 = vector.load %arg6[%c0_38, %c0_39] : memref<128x128xf32, #tpu.memory_space<vmem>>, vector<128x128xf32>
    %cst_40 = arith.constant dense<0.000000e+00> : vector<32x128xf32>
    %84 = tpu.matmul %82, %83, %cst_40 {dimension_numbers = #tpu.dot_dimension_numbers<[1], [0], [0], [1], [0, 0, 1, 1], [], []>} : vector<32x128xf32>, vector<128x128xf32>, vector<32x128xf32> -> vector<32x128xf32>
    %85 = vector.broadcast %3 : vector<1x128xf32> to vector<32x128xf32>
    %86 = arith.addf %84, %85 : vector<32x128xf32>
    %c32_41 = arith.constant 32 : index
    %c0_42 = arith.constant 0 : index
    %87 = vector.load %arg8[%c32_41, %c0_42] : memref<64x128xf32, #tpu.memory_space<vmem>>, vector<32x128xf32>
    tpu.vector_store %arg8[%c32_41, %c0_42], %86 {strides = array<i32>} : memref<64x128xf32, #tpu.memory_space<vmem>>, vector<32x128xf32>,
    return
  }
  func.func @transform_0(%arg0: i32) -> (i32, i32) {
    %c0_i32 = arith.constant 0 : i32
    %c0_i32_0 = arith.constant 0 : i32
    return %arg0, %c0_i32 : i32, i32
  }
  func.func @transform_1(%arg0: i32) -> (i32, i32) {
    %c0_i32 = arith.constant 0 : i32
    %c0_i32_0 = arith.constant 0 : i32
    %c0_i32_1 = arith.constant 0 : i32
    return %c0_i32, %c0_i32_0 : i32, i32
  }
  func.func @transform_2(%arg0: i32) -> (i32, i32) {
    %c0_i32 = arith.constant 0 : i32
    %c0_i32_0 = arith.constant 0 : i32
    %c0_i32_1 = arith.constant 0 : i32
    return %c0_i32, %c0_i32_0 : i32, i32
  }
  func.func @transform_3(%arg0: i32) -> (i32, i32) {
    %c0_i32 = arith.constant 0 : i32
    %c0_i32_0 = arith.constant 0 : i32
    %c0_i32_1 = arith.constant 0 : i32
    return %c0_i32, %c0_i32_0 : i32, i32
  }
  func.func @transform_4(%arg0: i32) -> (i32, i32) {
    %c0_i32 = arith.constant 0 : i32
    %c0_i32_0 = arith.constant 0 : i32
    %c0_i32_1 = arith.constant 0 : i32
    return %c0_i32, %c0_i32_0 : i32, i32
  }
  func.func @transform_5(%arg0: i32) -> (i32, i32) {
    %c0_i32 = arith.constant 0 : i32
    %c0_i32_0 = arith.constant 0 : i32
    %c0_i32_1 = arith.constant 0 : i32
    return %c0_i32, %c0_i32_0 : i32, i32
  }
  func.func @transform_6(%arg0: i32) -> (i32, i32) {
    %c0_i32 = arith.constant 0 : i32
    %c0_i32_0 = arith.constant 0 : i32
    %c0_i32_1 = arith.constant 0 : i32
    return %c0_i32, %c0_i32_0 : i32, i32
  }
  func.func @transform_7(%arg0: i32) -> (i32, i32) {
    %c0_i32 = arith.constant 0 : i32
    %c0_i32_0 = arith.constant 0 : i32
    return %arg0, %c0_i32 : i32, i32
  }
}

</mosaic_0001>

<bundles_post_ra>
// kernel: tpu_custom_call.1
= control target key start
LH: loop header
LB: loop body
LE: loop exit
PB: predicated region body
PF: predicated region fallthrough
CT: control target
= control target key end

     0   :  { %12 = vsyncpa [#allocation3], 0  ;;  %s1682_s0 = inlined_call_operand.vmem [shape: f32[256,32], index: 0, kind: input, shape index: {}]   ;;  %s1683_s1 = inlined_call_operand.vmem [shape: f32[32,128], index: 1, kind: input, shape index: {}]   ;;  %s1684_s2 = inlined_call_operand.vmem [shape: f32[1,128], index: 2, kind: input, shape index: {}]   ;;  %s1685_s3 = inlined_call_operand.vmem [shape: f32[1,128], index: 3, kind: input, shape index: {}]   ;;  %s1686_s4 = inlined_call_operand.vmem [shape: f32[1,128], index: 4, kind: input, shape index: {}]   ;;  %s1687_s5 = inlined_call_operand.vmem [shape: f32[128,128], index: 5, kind: input, shape index: {}]   ;;  %s1688_s6 = inlined_call_operand.vmem [shape: f32[1,128], index: 6, kind: input, shape index: {}]   ;;  %s1689_s7 = inlined_call_operand.hbm [shape: f32[256,128], index: 7, kind: output, shape index: {}]  }
   0x1   :  { %14 = vsyncpa [#allocation3 + $0x1], 0  ;;  %s1418_s24 = smov 0   ;;  %s1420_s25 = smov 0  }
   0x2   :  { %s1422_s26 = smov 0   ;;  %s1424_s27 = smov 0  }
   0x3 LB: > { %s1439_s28 = sadd.s32 4294967295, %s1373_s27   ;;  %s973_s29 = sadd.s32 4294967294, %s1373_s27   ;;  %s1373_s27 = sphi %s1424_s27, %s1695_s27   ;;  %s1369_s26 = sphi %s1422_s26, %s1694_s26   ;;  %s1365_s25 = sphi %s1420_s25, %s1693_s25   ;;  %s1361_s24 = sphi %s1418_s24, %s1692_s24  }
   0x4   : > { %s1443_s30 = sadd.s32 1, %s1373_s27   ;;  %s179_s8 = sadd.s32 1, %s1369_s26 }
   0x5   : > { %s176_s9 = ssub.s32 %s1373_s27, %s1443_s30  ;;  %p189_p0 = scmp.ne.s32.totalorder %s1369_s26, %s1365_s25 }
   0x6   : > { %p177_p1 = scmp.eq.s32.totalorder %s176_s9, 0  ;;  %p190_p2 = scmp.eq.s32.totalorder %s1439_s28, 3 }
   0x7   : > { %p195_p3 = scmp.ne.s32.totalorder %s1365_s25, %s1361_s24  ;;  %p196_p4 = scmp.eq.s32.totalorder %s973_s29, 3 }
   0x8   : > { %s1454_s10 = scalar_select %p177_p1, %s1369_s26, %s179_s8  }
   0x9   : > { %p1456_p5 = por %p190_p2, %p189_p0  ;;  %p1460_p6 = por %p196_p4, %p195_p3 }
   0xa   : > { %p976_p7 = scmp.ge.s32.totalorder %s1373_s27, 1  ;;  %p241_p8 = scmp.lt.s32.totalorder %s1373_s27, 5 }
   0xc   : > { %p242_p9 = pnand %p976_p7, %p241_p8 }
   0xd   : > { %v288_v0 = vld [vmem:[%s1683_s1] sm:$0xff] (!%p242_p9)  ;;  %v289_v1 = vld [vmem:[%s1683_s1 + $0x8] sm:$0xff] (!%p242_p9)  ;;  %v290_v2 = vld [vmem:[%s1683_s1 + $0x10] sm:$0xff] (!%p242_p9)  ;;  %s978_s19 = sshll.u32 (!%p242_p9), %s1439_s28, 3  ;;  %vm298_vm0 = vcmask (!%p242_p9), 261120   ;;  %s997_s13 = sshll.u32 (!%p242_p9), %s1439_s28, 10 }
   0xe   : > { %245 = sbr.rel (%p242_p9) target bundleno = 684 (0x2ac), region = 48  ;;  %v1158_v3 = vpack.c.bf16 (!%p242_p9), %v289_v1, %v288_v0  ;;  %v291_v4 = vld [vmem:[%s1683_s1 + $0x18] sm:$0xff] (!%p242_p9)  ;;  %p274_p10 = scmp.lt.s32.totalorder (!%p242_p9), %s978_s19, 31  ;;  %v980_v14 = vld [vmem:[%s1684_s2] ss:$0 sm:$0xff] (!%p242_p9) }
   0xf   : > { %v1162_v5 = vpack.c.bf16 (!%p242_p9), %v291_v4, %v290_v2  ;;  %s1635_s17 = scalar_lea.hbm (!%p242_p9), %s1689_s7, %s997_s13 }
  0x10   : > { %1159 = vmatprep.subr.bf16.mxu1 (!%p242_p9), %v1158_v3  ;;  %1199 = vmatprep.subr.bf16.mxu0 (!%p242_p9), %v1158_v3 }
  0x11   : > { %1161 = vmatpush3.bf16.msra.mxu1 (!%p242_p9), %v1158_v3  ;;  %1201 = vmatpush3.bf16.msra.mxu0 (!%p242_p9), %v1158_v3 }
  0x12   : > { %1163 = vmatprep.subr.bf16.mxu1 (!%p242_p9), %v1162_v5  ;;  %1203 = vmatprep.subr.bf16.mxu0 (!%p242_p9), %v1162_v5 }
  0x15   : > { %s1697_s19 = smov (!%p274_p10, %s978_s19), 31  ;;  %1165 = vmatpush3.bf16.msra.mxu1 %v1162_v5  ;;  %1205 = vmatpush3.bf16.msra.mxu0 %v1162_v5 }
  0x16   : > { %s979_s22 = sshll.u32 %s1697_s19, 3  ;;  %s1375_s19 = smov [#allocation2]  }
  0x17   : > { %s277_s8 = scalar_lea.vmem %s1682_s0, %s979_s22  ;;  %s270_s22 = sand.u32 1, %s1365_s25  }
  0x18   : > { %v284_v6 = vld [vmem:[%s277_s8] sm:$0xff]  ;;  %v285_v8 = vld [vmem:[%s277_s8 + $0x8] sm:$0xff]  ;;  %v286_v10 = vld [vmem:[%s277_s8 + $0x10] sm:$0xff]  ;;  %s977_s23 = sshll.u32 %s270_s22, 6  ;;  %s1641_s28 = scalar_lea.sflag [#allocation3], %s270_s22 }
  0x19   : > { %v603_v7 = vld [vmem:[%s277_s8 + $0x20] sm:$0xff]  ;;  %v604_v9 = vld [vmem:[%s277_s8 + $0x28] sm:$0xff]  ;;  %1062 = vmatprep.mubr.msk.f32.mxu1 %vm298_vm0, %v284_v6  ;;  %v605_v11 = vld [vmem:[%s277_s8 + $0x30] sm:$0xff]  ;;  %s272_s9 = scalar_lea.vmem [#allocation2], %s977_s23  ;;  %s1315_s20 = sshll.u32 %s1375_s19, 4  ;;  %s1316_s20 = int_to_ptr.vmem [resolvable:$false] %s1315_s20 }
  0x1a   : > { %1114 = vmatprep.mubr.msk.f32.mxu0 %vm298_vm0, %v603_v7  ;;  %1063 = vmatmul.mubr.msk.f32.vlgmr.msra.gmra.mrb[0].mxu1 %vm298_vm0, %v285_v8  ;;  %v287_v12 = vld [vmem:[%s277_s8 + $0x18] sm:$0xff]  ;;  %s911_s14 = sshll.u32 %s272_s9, 4  ;;  %s1317_s21 = scalar_lea.vmem %s1316_s20, 2048  ;;  %s1637_s14 = int_to_ptr.vmem [resolvable:$true] %s911_s14 }
  0x1b   : > { %1115 = vmatmul.mubr.msk.f32.vlgmr.msra.gmra.mrb[0].mxu0 %vm298_vm0, %v604_v9  ;;  %1065 = vmatprep.mubr.msk.f32.mxu1 %vm298_vm0, %v286_v10  ;;  %v606_v13 = vld [vmem:[%s277_s8 + $0x38] sm:$0xff]  ;;  %s1311_s18 = scalar_lea.vmem %s1637_s14, 1024  ;;  %p1318_p0 = scmp.lt.s32.totalorder %s1637_s14, %s1316_s20 }
  0x1c   : > { %1117 = vmatprep.mubr.msk.f32.mxu0 %vm298_vm0, %v605_v11  ;;  %v792_v11 = vld [vmem:[%s1687_s5] sm:$0xff]  ;;  %p1312_p11 = scmp.ne.s32.totalorder %s1637_s14, %s1311_s18  ;;  %p1319_p1 = scmp.lt.s32.totalorder %s1317_s21, %s1311_s18 }
  0x1e   : > { %1066 = vmatmul.mubr.msk.f32.gmra.mrb[2].mxu1 %vm298_vm0, %v287_v12  ;;  %v793_v12 = vld [vmem:[%s1687_s5 + $0x8] sm:$0xff]  ;;  %p1313_p12 = pnand %p1312_p11, %p1456_p5  ;;  %p1320_p2 = por %p1319_p1, %p1318_p0 }
  0x1f   : > { %1118 = vmatmul.mubr.msk.f32.gmra.mrb[2].mxu0 %vm298_vm0, %v606_v13  ;;  %v1206_v13 = vpack.c.bf16 %v793_v12, %v792_v11 }
  0x20   : > { %p1314_p13 = pneg %p1313_p12 }
  0x21   : > { %1207 = vmatprep.subr.bf16.mxu0 %v1206_v13  ;;  %1167 = vmatprep.subr.bf16.mxu1 %v1206_v13 }
  0x22   : > { %1209 = vmatpush3.bf16.msra.mxu0 %v1206_v13  ;;  %1169 = vmatpush3.bf16.msra.mxu1 %v1206_v13  ;;  %p1321_p3 = pnand %p1320_p2, %p1314_p13 }
  0xed   : > { %v1064_v15 = vpop.f32.mrb[0].mxu1 }
  0xee   : > { %v1116_v16 = vpop.f32.mrb[0].mxu0  ;;  %v383_v17 = vadd.f32 %v1064_v15, %v980_v14  ;;  %v377_v19 = vpop.f32.mrb[1].mxu1 }
  0xef   : > { %v695_v18 = vadd.f32 %v1116_v16, %v980_v14  ;;  %v689_v20 = vpop.f32.mrb[1].mxu0  ;;  %v378_v21 = vadd.f32 %v980_v14, %v377_v19  ;;  %v794_v16 = vld [vmem:[%s1687_s5 + $0x10] sm:$0xff] }
  0xf0   : > { %v690_v22 = vadd.f32 %v980_v14, %v689_v20  ;;  %v401_v23 = vmul.f32 0.70710677, %v383_v17  ;;  %v397_v39 = vmul.f32 0.5, %v383_v17  ;;  %v795_v17 = vld [vmem:[%s1687_s5 + $0x18] sm:$0xff] }
  0xf1   : > { %v713_v24 = vmul.f32 0.70710677, %v695_v18  ;;  %v400_v25 = vmul.f32 0.70710677, %v378_v21  ;;  %v1067_v27 = vpop.f32.mrb[2].mxu1  ;;  %v396_v45 = vmul.f32 0.5, %v378_v21 }
  0xf2   : > { %v712_v26 = vmul.f32 0.70710677, %v690_v22  ;;  %1279 = verf.f32 %v401_v23  ;;  %v1119_v28 = vpop.f32.mrb[2].mxu0  ;;  %v387_v29 = vpop.f32.mrb[3].mxu1  ;;  %v393_v32 = vadd.f32 %v1067_v27, %v980_v14  ;;  %v709_v49 = vmul.f32 0.5, %v695_v18  ;;  %v796_v21 = vld [vmem:[%s1687_s5 + $0x20] sm:$0xff] }
  0xf3   : > { %1281 = verf.f32 %v713_v24  ;;  %v699_v30 = vpop.f32.mrb[3].mxu0  ;;  %v705_v31 = vadd.f32 %v1119_v28, %v980_v14  ;;  %v388_v37 = vadd.f32 %v980_v14, %v387_v29  ;;  %v708_v52 = vmul.f32 0.5, %v690_v22  ;;  %v797_v22 = vld [vmem:[%s1687_s5 + $0x28] sm:$0xff]  ;;  %v798_v24 = vld [vmem:[%s1687_s5 + $0x30] sm:$0xff]  ;;  %v800_v27 = vld [vmem:[%s1687_s5 + $0x40] sm:$0xff] }
  0xf4   : > { %1283 = verf.f32 %v400_v25  ;;  %v700_v34 = vadd.f32 %v980_v14, %v699_v30  ;;  %v403_v36 = vmul.f32 0.70710677, %v393_v32  ;;  %v399_v63 = vmul.f32 0.5, %v393_v32  ;;  %v799_v25 = vld [vmem:[%s1687_s5 + $0x38] sm:$0xff]  ;;  %v801_v28 = vld [vmem:[%s1687_s5 + $0x48] sm:$0xff]  ;;  %v802_v30 = vld [vmem:[%s1687_s5 + $0x50] sm:$0xff] }
  0xf5   : > { %1285 = verf.f32 %v712_v26  ;;  %v715_v33 = vmul.f32 0.70710677, %v705_v31  ;;  %v402_v48 = vmul.f32 0.70710677, %v388_v37  ;;  %v711_v59 = vmul.f32 0.5, %v705_v31  ;;  %v803_v31 = vld [vmem:[%s1687_s5 + $0x58] sm:$0xff] }
  0xf6   : > { %v714_v42 = vmul.f32 0.70710677, %v700_v34  ;;  %v710_v3 = vmul.f32 0.5, %v700_v34  ;;  %v398_v6 = vmul.f32 0.5, %v388_v37  ;;  %v1210_v18 = vpack.c.bf16 %v795_v17, %v794_v16  ;;  %v805_v34 = vld [vmem:[%s1687_s5 + $0x68] sm:$0xff]  ;;  %v807_v37 = vld [vmem:[%s1687_s5 + $0x78] sm:$0xff] }
  0xf7   : > { %1287 = verf.f32 %v715_v33  ;;  %v1214_v23 = vpack.c.bf16 %v797_v22, %v796_v21  ;;  %v1218_v26 = vpack.c.bf16 %v799_v25, %v798_v24  ;;  %v1222_v29 = vpack.c.bf16 %v801_v28, %v800_v27  ;;  %v804_v33 = vld [vmem:[%s1687_s5 + $0x60] sm:$0xff] }
  0xf8   : > { %1289 = verf.f32 %v403_v36  ;;  %1211 = vmatprep.subr.bf16.mxu0 %v1210_v18  ;;  %1171 = vmatprep.subr.bf16.mxu1 %v1210_v18  ;;  %v1226_v32 = vpack.c.bf16 %v803_v31, %v802_v30  ;;  %v806_v36 = vld [vmem:[%s1687_s5 + $0x70] sm:$0xff] }
  0xf9   : > { %1291 = verf.f32 %v714_v42  ;;  %1213 = vmatpush3.bf16.msra.mxu0 %v1210_v18  ;;  %1173 = vmatpush3.bf16.msra.mxu1 %v1210_v18 }
  0xfa   : > { %1293 = verf.f32 %v402_v48  ;;  %1215 = vmatprep.subr.bf16.mxu0 %v1214_v23  ;;  %1175 = vmatprep.subr.bf16.mxu1 %v1214_v23 }
  0xfc   : > { %v1280_v35 = vpop.eup %1279 }
  0xfd   : > { %v1282_v38 = vpop.eup %1281  ;;  %v409_v40 = vadd.f32 1.0, %v1280_v35  ;;  %1217 = vmatpush3.bf16.msra.mxu0 %v1214_v23  ;;  %1177 = vmatpush3.bf16.msra.mxu1 %v1214_v23  ;;  %v1230_v35 = vpack.c.bf16 %v805_v34, %v804_v33 }
  0xfe   : > { %v1284_v41 = vpop.eup %1283  ;;  %v721_v44 = vadd.f32 1.0, %v1282_v38  ;;  %1219 = vmatprep.subr.bf16.mxu0 %v1218_v26  ;;  %1179 = vmatprep.subr.bf16.mxu1 %v1218_v26  ;;  %v1234_v38 = vpack.c.bf16 %v807_v37, %v806_v36 }
  0xff   : > { %v1286_v43 = vpop.eup %1285  ;;  %v408_v46 = vadd.f32 1.0, %v1284_v41  ;;  %v1493_v47 = vmul.f32 %v409_v40, %v397_v39 }
 0x100   : > { %v720_v50 = vadd.f32 1.0, %v1286_v43  ;;  %v1499_v53 = vmul.f32 %v721_v44, %v709_v49 }
 0x101   : > { %418 = vadd.xlane.f32.xlu1 %v1493_v47  ;;  %v1496_v51 = vmul.f32 %v408_v46, %v396_v45  ;;  %v1288_v56 = vpop.eup %1287  ;;  %v429_v57 = vmul.f32 %v1493_v47, %v1493_v47  ;;  %1221 = vmatpush3.bf16.msra.mxu0 %v1218_v26 }
 0x102   : > { %v1502_v54 = vmul.f32 %v720_v50, %v708_v52  ;;  %v741_v55 = vmul.f32 %v1499_v53, %v1499_v53  ;;  %v1290_v58 = vpop.eup %1289  ;;  %v723_v60 = vadd.f32 1.0, %v1288_v56  ;;  %1181 = vmatpush3.bf16.msra.mxu1 %v1218_v26  ;;  %1223 = vmatprep.subr.bf16.mxu0 %v1222_v29 }
 0x103   : > { %416 = vadd.xlane.f32.xlu0 %v1496_v51  ;;  %v1292_v62 = vpop.eup %1291  ;;  %v411_v0 = vadd.f32 1.0, %v1290_v58  ;;  %v428_v1 = vmul.f32 %v1496_v51, %v1496_v51  ;;  %1183 = vmatprep.subr.bf16.mxu1 %v1222_v29 }
 0x104   : > { %v740_v61 = vmul.f32 %v1502_v54, %v1502_v54  ;;  %v1294_v2 = vpop.eup %1293  ;;  %v722_v4 = vadd.f32 1.0, %v1292_v62  ;;  %v1513_v5 = vmul.f32 %v723_v60, %v711_v59 }
 0x105   : > { %730 = vadd.xlane.f32.xlu1 %v1499_v53  ;;  %v410_v7 = vadd.f32 1.0, %v1294_v2  ;;  %v1516_v8 = vmul.f32 %v411_v0, %v399_v63  ;;  %1225 = vmatpush3.bf16.msra.mxu0 %v1222_v29 }
 0x106   : > { %v1519_v9 = vmul.f32 %v722_v4, %v710_v3  ;;  %v743_v19 = vmul.f32 %v1513_v5, %v1513_v5  ;;  %1185 = vmatpush3.bf16.msra.mxu1 %v1222_v29  ;;  %1227 = vmatprep.subr.bf16.mxu0 %v1226_v32 }
 0x107   : > { %728 = vadd.xlane.f32.xlu0 %v1502_v54  ;;  %v1522_v10 = vmul.f32 %v410_v7, %v398_v6  ;;  %v431_v20 = vmul.f32 %v1516_v8, %v1516_v8  ;;  %1187 = vmatprep.subr.bf16.mxu1 %v1226_v32 }
 0x108   : > { %v742_v14 = vmul.f32 %v1519_v9, %v1519_v9 }
 0x109   : > { %746 = vadd.xlane.f32.xlu1 %v741_v55  ;;  %v430_v15 = vmul.f32 %v1522_v10, %v1522_v10  ;;  %1229 = vmatpush3.bf16.msra.mxu0 %v1226_v32 }
 0x10a   : > { %1189 = vmatpush3.bf16.msra.mxu1 %v1226_v32  ;;  %1231 = vmatprep.subr.bf16.mxu0 %v1230_v35 }
 0x10b   : > { %434 = vadd.xlane.f32.xlu0 %v429_v57  ;;  %1191 = vmatprep.subr.bf16.mxu1 %v1230_v35 }
 0x10d   : > { %744 = vadd.xlane.f32.xlu1 %v740_v61  ;;  %1233 = vmatpush3.bf16.msra.mxu0 %v1230_v35 }
 0x10e   : > { %1193 = vmatpush3.bf16.msra.mxu1 %v1230_v35  ;;  %1235 = vmatprep.subr.bf16.mxu0 %v1234_v38 }
 0x10f   : > { %432 = vadd.xlane.f32.xlu0 %v428_v1  ;;  %1195 = vmatprep.subr.bf16.mxu1 %v1234_v38 }
 0x111   : > { %734 = vadd.xlane.f32.xlu1 %v1513_v5  ;;  %1237 = vmatpush3.bf16.msra.mxu0 %v1234_v38 }
 0x112   : > { %1197 = vmatpush3.bf16.msra.mxu1 %v1234_v38 }
 0x113   : > { %422 = vadd.xlane.f32.xlu0 %v1516_v8 }
 0x115   : > { %732 = vadd.xlane.f32.xlu1 %v1519_v9 }
 0x117   : > { %420 = vadd.xlane.f32.xlu0 %v1522_v10 }
 0x119   : > { %748 = vadd.xlane.f32.xlu1 %v742_v14 }
 0x11b   : > { %436 = vadd.xlane.f32.xlu0 %v430_v15 }
 0x11d   : > { %750 = vadd.xlane.f32.xlu1 %v743_v19 }
 0x11f   : > { %438 = vadd.xlane.f32.xlu0 %v431_v20 }
 0x18e   : > { %v419_v39 = vpop.xlane.xlu1 %418 }
 0x18f   : > { %v425_v44 = vmul.f32 0.041666668, %v419_v39  ;;  %v985_v39 = vld [vmem:[%s1685_s3] ss:$0 sm:$0xff] }
 0x190   : > { %v417_v40 = vpop.xlane.xlu0 %416 }
 0x191   : > { %v1583_v50 = vmul.f32 0.041666668, %v417_v40  ;;  %v445_v55 = vmul.f32 %v425_v44, %v425_v44  ;;  %v457_v32 = vsub.f32 %v1493_v47, %v425_v44 }
 0x192   : > { %v731_v41 = vpop.xlane.xlu1 %730 }
 0x193   : > { %v737_v42 = vmul.f32 0.041666668, %v731_v41  ;;  %v444_v63 = vmul.f32 %v1583_v50, %v1583_v50 }
 0x194   : > { %v729_v43 = vpop.xlane.xlu0 %728 }
 0x195   : > { %v757_v46 = vmul.f32 %v737_v42, %v737_v42  ;;  %v1581_v48 = vmul.f32 0.041666668, %v729_v43  ;;  %v769_v25 = vsub.f32 %v1499_v53, %v737_v42 }
 0x196   : > { %v747_v45 = vpop.xlane.xlu1 %746 }
 0x197   : > { %v753_v49 = vmul.f32 0.041666668, %v747_v45  ;;  %v756_v59 = vmul.f32 %v1581_v48, %v1581_v48  ;;  %v768_v40 = vsub.f32 %v1502_v54, %v1581_v48  ;;  %v986_v48 = vld [vmem:[%s1686_s4] ss:$0 sm:$0xff] }
 0x198   : > { %v435_v52 = vpop.xlane.xlu0 %434 }
 0x199   : > { %v761_v56 = vsub.f32 %v753_v49, %v757_v46  ;;  %v441_v57 = vmul.f32 0.041666668, %v435_v52  ;;  %v456_v52 = vsub.f32 %v1496_v51, %v1583_v50 }
 0x19a   : > { %v745_v58 = vpop.xlane.xlu1 %744 }
 0x19b   : > { %v765_v60 = vmax.f32 %v761_v56, 0.0  ;;  %v449_v61 = vsub.f32 %v441_v57, %v445_v55  ;;  %v752_v62 = vmul.f32 0.041666668, %v745_v58 }
 0x19c   : > { %v433_v0 = vpop.xlane.xlu0 %432 }
 0x19d   : > { %v773_v1 = vadd.f32 1e-05, %v765_v60  ;;  %v453_v2 = vmax.f32 %v449_v61, 0.0  ;;  %v760_v3 = vsub.f32 %v752_v62, %v756_v59  ;;  %v440_v4 = vmul.f32 0.041666668, %v433_v0 }
 0x19e   : > { %v735_v6 = vpop.xlane.xlu1 %734 }
 0x19f   : > { %1295 = vrsqrt.f32 %v773_v1  ;;  %v461_v7 = vadd.f32 1e-05, %v453_v2  ;;  %v764_v11 = vmax.f32 %v760_v3, 0.0  ;;  %v448_v12 = vsub.f32 %v440_v4, %v444_v63 }
 0x1a0   : > { %v423_v13 = vpop.xlane.xlu0 %422  ;;  %v1593_v22 = vmul.f32 0.041666668, %v735_v6 }
 0x1a1   : > { %1297 = vrsqrt.f32 %v461_v7  ;;  %v772_v14 = vadd.f32 1e-05, %v764_v11  ;;  %v452_v15 = vmax.f32 %v448_v12, 0.0  ;;  %v1598_v26 = vmul.f32 0.041666668, %v423_v13 }
 0x1a2   : > { %v733_v16 = vpop.xlane.xlu1 %732  ;;  %v759_v36 = vmul.f32 %v1593_v22, %v1593_v22 }
 0x1a3   : > { %1299 = vrsqrt.f32 %v772_v14  ;;  %v460_v17 = vadd.f32 1e-05, %v452_v15  ;;  %v1589_v18 = vmul.f32 0.041666668, %v733_v16  ;;  %v447_v47 = vmul.f32 %v1598_v26, %v1598_v26 }
 0x1a4   : > { %v421_v19 = vpop.xlane.xlu0 %420  ;;  %v771_v14 = vsub.f32 %v1513_v5, %v1593_v22 }
 0x1a5   : > { %1301 = vrsqrt.f32 %v460_v17  ;;  %v1591_v20 = vmul.f32 0.041666668, %v421_v19  ;;  %v758_v23 = vmul.f32 %v1589_v18, %v1589_v18  ;;  %v770_v6 = vsub.f32 %v1519_v9, %v1589_v18 }
 0x1a6   : > { %v749_v21 = vpop.xlane.xlu1 %748  ;;  %v459_v19 = vsub.f32 %v1516_v8, %v1598_v26  ;;  %v987_v8 = vld [vmem:[%s1688_s6] ss:$0 sm:$0xff] }
 0x1a7   : > { %v754_v24 = vmul.f32 0.041666668, %v749_v21  ;;  %v446_v29 = vmul.f32 %v1591_v20, %v1591_v20  ;;  %v458_v11 = vsub.f32 %v1522_v10, %v1591_v20 }
 0x1a8   : > { %v437_v27 = vpop.xlane.xlu0 %436 }
 0x1a9   : > { %v1296_v28 = vpop.eup %1295  ;;  %v762_v30 = vsub.f32 %v754_v24, %v758_v23  ;;  %v442_v31 = vmul.f32 0.041666668, %v437_v27 }
 0x1aa   : > { %v781_v33 = vmul.f32 %v1296_v28, %v769_v25  ;;  %v751_v34 = vpop.xlane.xlu1 %750 }
 0x1ab   : > { %v1298_v35 = vpop.eup %1297  ;;  %v766_v37 = vmax.f32 %v762_v30, 0.0  ;;  %v450_v38 = vsub.f32 %v442_v31, %v446_v29  ;;  %v755_v53 = vmul.f32 0.041666668, %v751_v34 }
 0x1ac   : > { %v469_v41 = vmul.f32 %v1298_v35, %v457_v32  ;;  %v439_v42 = vpop.xlane.xlu0 %438  ;;  %v785_v56 = vmul.f32 %v985_v39, %v781_v33 }
 0x1ad   : > { %v1300_v43 = vpop.eup %1299  ;;  %v774_v44 = vadd.f32 1e-05, %v766_v37  ;;  %v454_v45 = vmax.f32 %v450_v38, 0.0  ;;  %v763_v46 = vsub.f32 %v755_v53, %v759_v36  ;;  %v443_v49 = vmul.f32 0.041666668, %v439_v42 }
 0x1ae   : > { %v780_v55 = vmul.f32 %v1300_v43, %v768_v40  ;;  %v479_v0 = vmul.f32 %v985_v39, %v469_v41  ;;  %v789_v50 = vadd.f32 %v986_v48, %v785_v56 }
 0x1af   : > { %v1302_v57 = vpop.eup %1301  ;;  %1303 = vrsqrt.f32 %v774_v44  ;;  %v462_v58 = vadd.f32 1e-05, %v454_v45  ;;  %v767_v59 = vmax.f32 %v763_v46, 0.0  ;;  %v451_v54 = vsub.f32 %v443_v49, %v447_v47 }
 0x1b0   : > { %v784_v60 = vmul.f32 %v985_v39, %v780_v55  ;;  %v468_v61 = vmul.f32 %v1302_v57, %v456_v52  ;;  %v489_v4 = vadd.f32 %v986_v48, %v479_v0 }
 0x1b1   : > { %1305 = vrsqrt.f32 %v462_v58  ;;  %v775_v62 = vadd.f32 1e-05, %v767_v59  ;;  %v455_v63 = vmax.f32 %v451_v54, 0.0 }
 0x1b2   : > { %v788_v1 = vadd.f32 %v986_v48, %v784_v60  ;;  %v478_v2 = vmul.f32 %v985_v39, %v468_v61 }
 0x1b3   : > { %1307 = vrsqrt.f32 %v775_v62  ;;  %v463_v51 = vadd.f32 1e-05, %v455_v63 }
 0x1b4   : > { %1152 = vmatprep.mubr.f32.mxu0 %v788_v1  ;;  %v488_v3 = vadd.f32 %v986_v48, %v478_v2 }
 0x1b5   : > { %1309 = vrsqrt.f32 %v463_v51  ;;  %1153 = vmatmul.mubr.f32.vlgmr.msra.gmra.mrb[4].mxu0 %v789_v50 }
 0x1b6   : > { %1100 = vmatprep.mubr.f32.mxu1 %v488_v3 }
 0x1b7   : > { %1101 = vmatmul.mubr.f32.vlgmr.msra.gmra.mrb[4].mxu1 %v489_v4 }
 0x1b9   : > { %v1304_v7 = vpop.eup %1303 }
 0x1ba   : > { %v782_v12 = vmul.f32 %v1304_v7, %v770_v6 }
 0x1bb   : > { %v1306_v13 = vpop.eup %1305 }
 0x1bc   : > { %v786_v15 = vmul.f32 %v985_v39, %v782_v12  ;;  %v470_v16 = vmul.f32 %v1306_v13, %v458_v11 }
 0x1bd   : > { %v1308_v17 = vpop.eup %1307 }
 0x1be   : > { %v790_v21 = vadd.f32 %v986_v48, %v786_v15  ;;  %v480_v23 = vmul.f32 %v985_v39, %v470_v16  ;;  %v783_v9 = vmul.f32 %v1308_v17, %v771_v14 }
 0x1bf   : > { %v1310_v18 = vpop.eup %1309 }
 0x1c0   : > { %1155 = vmatprep.mubr.f32.mxu0 %v790_v21  ;;  %v490_v24 = vadd.f32 %v986_v48, %v480_v23  ;;  %v787_v10 = vmul.f32 %v985_v39, %v783_v9  ;;  %v471_v20 = vmul.f32 %v1310_v18, %v459_v19 }
 0x1c2   : > { %1103 = vmatprep.mubr.f32.mxu1 %v490_v24  ;;  %v791_v25 = vadd.f32 %v986_v48, %v787_v10  ;;  %v481_v27 = vmul.f32 %v985_v39, %v471_v20 }
 0x1c4   : > { %1156 = vmatmul.mubr.f32.gmra.mrb[6].mxu0 %v791_v25  ;;  %v491_v5 = vadd.f32 %v986_v48, %v481_v27 }
 0x1c6   : > { %1104 = vmatmul.mubr.f32.gmra.mrb[6].mxu1 %v491_v5 }
 0x288   : > { %v1154_v22 = vpop.f32.mrb[4].mxu0 }
 0x289   : > { %v880_v26 = vadd.f32 %v1154_v22, %v987_v8  ;;  %v874_v28 = vpop.f32.mrb[5].mxu0 }
 0x28a   : > { %v1102_v29 = vpop.f32.mrb[4].mxu1  ;;  %v875_v30 = vadd.f32 %v987_v8, %v874_v28 }
 0x28b   : > { %894 = vst [vmem:[%s272_s9 + $0x28] sm:$0xff] %v880_v26  ;;  %v586_v31 = vadd.f32 %v1102_v29, %v987_v8  ;;  %v580_v32 = vpop.f32.mrb[5].mxu1 }
 0x28c   : > { %893 = vst [vmem:[%s272_s9 + $0x20] sm:$0xff] %v875_v30  ;;  %v581_v33 = vadd.f32 %v987_v8, %v580_v32 }
 0x28d   : > { %600 = vst [vmem:[%s272_s9 + $0x8] sm:$0xff] %v586_v31 }
 0x28e   : > { %599 = vst [vmem:[%s272_s9] sm:$0xff] %v581_v33 }
 0x297   : > { %v1157_v34 = vpop.f32.mrb[6].mxu0 }
 0x298   : > { %v890_v35 = vadd.f32 %v1157_v34, %v987_v8  ;;  %v884_v36 = vpop.f32.mrb[7].mxu0 }
 0x299   : > { %v1105_v37 = vpop.f32.mrb[6].mxu1  ;;  %v885_v38 = vadd.f32 %v987_v8, %v884_v36 }
 0x29a   : > { %896 = vst [vmem:[%s272_s9 + $0x38] sm:$0xff] %v890_v35  ;;  %v596_v53 = vadd.f32 %v1105_v37, %v987_v8  ;;  %v590_v39 = vpop.f32.mrb[7].mxu1 }
 0x29b   : > { %895 = vst [vmem:[%s272_s9 + $0x30] sm:$0xff] %v885_v38  ;;  %v591_v40 = vadd.f32 %v987_v8, %v590_v39 }
 0x29c   : > { %602 = vst [vmem:[%s272_s9 + $0x18] sm:$0xff] %v596_v53 }
 0x29d   : > { %601 = vst [vmem:[%s272_s9 + $0x10] sm:$0xff] %v591_v40 }
 0x29e   : > { %1324 = shalt.err (!%p1321_p3)
}
 0x29f   : > { %s1325_s22 = scalar_lea.hbm %s1635_s17, 1024  ;;  %s1329_s8 = scalar_lea.hbm %s1689_s7, 4096 }
 0x2a0   : > { %p1326_p4 = scmp.ne.s32.totalorder %s1635_s17, %s1325_s22  ;;  %p1330_p9 = scmp.lt.u32.totalorder %s1635_s17, %s1689_s7 }
 0x2a1   : > { %p1331_p10 = scmp.lt.u32.totalorder %s1329_s8, %s1325_s22  ;;  %p1333_p12 = scmp.lt.u32.totalorder %s1325_s22, %s1635_s17 }
 0x2a2   : > { %p1327_p7 = pnand %p1326_p4, %p1456_p5 }
 0x2a3   : > { %p1332_p11 = por %p1331_p10, %p1330_p9 }
 0x2a4   : > { %p1328_p8 = pneg %p1327_p7 }
 0x2a5   : > { %p1334_p13 = por %p1333_p12, %p1332_p11 }
 0x2a7   : > { %p1335_p0 = pnand %p1334_p13, %p1328_p8 }
 0x2a9   : > { %1338 = shalt.err (!%p1335_p0)
}
 0x2aa   : > { %s1376_s15 = smov 128   ;;  %s1377_s16 = smov 8  }
 0x2ab   : > { %1238 = dma.vmem_to_hbm [thread:$0]  (%p1456_p5), %s1637_s14, 1024, %s1635_s17, %s1641_s28, %s1376_s15, %s1376_s15, %s1377_s16  }
 0x2ac PF: > { %p1244_p1 = scmp.ge.s32.totalorder %s1373_s27, 2  ;;  %s926_s18 = sand.u32 1, %s1361_s24  }
 0x2ad   : > { %s927_s19 = scalar_lea.sflag [#allocation3], %s926_s18 }
 0x2ae   : > { %p1241_p2 = pnand %p1244_p1, %p1460_p6 }
 0x2b0   : > { %1356 = dma.done.wait (!%p1241_p2), %s927_s19, 1024  }
 0x2b1   : > { %1358 = vsyncadd (!%p1241_p2), %s927_s19, 4294966272  ;;  %p17_p3 = scmp.ge.s32.totalorder %s1443_s30, 6   ;;  %s1692_s24 = smov %s1365_s25 }
 0x2b2   : > { %s1693_s25 = smov %s1369_s26  ;;  %s1694_s26 = smov %s1454_s10 }
 0x2b3   : > { %s1695_s27 = smov %s1443_s30  ;;  %19 = sbr.rel (!%p17_p3) target bundleno = 3 (0x3), region = 83 }
 0x2ba   :  { %932 = vsyncpa [#allocation3], 1 }
 0x2bb   :  { %934 = vsyncpa [#allocation3 + $0x1], 1 }

// kernel: tpu_custom_call.1
= control target key start
LH: loop header
LB: loop body
LE: loop exit
PB: predicated region body
PF: predicated region fallthrough
CT: control target
= control target key end

     0   :  { %12 = vsyncpa [#allocation3], 0  ;;  %s1682_s0 = inlined_call_operand.vmem [shape: f32[256,32], index: 0, kind: input, shape index: {}]   ;;  %s1683_s1 = inlined_call_operand.vmem [shape: f32[32,128], index: 1, kind: input, shape index: {}]   ;;  %s1684_s2 = inlined_call_operand.vmem [shape: f32[1,128], index: 2, kind: input, shape index: {}]   ;;  %s1685_s3 = inlined_call_operand.vmem [shape: f32[1,128], index: 3, kind: input, shape index: {}]   ;;  %s1686_s4 = inlined_call_operand.vmem [shape: f32[1,128], index: 4, kind: input, shape index: {}]   ;;  %s1687_s5 = inlined_call_operand.vmem [shape: f32[128,128], index: 5, kind: input, shape index: {}]   ;;  %s1688_s6 = inlined_call_operand.vmem [shape: f32[1,128], index: 6, kind: input, shape index: {}]   ;;  %s1689_s7 = inlined_call_operand.hbm [shape: f32[256,128], index: 7, kind: output, shape index: {}]  }
   0x1   :  { %14 = vsyncpa [#allocation3 + $0x1], 0  ;;  %s1418_s24 = smov 0   ;;  %s1420_s25 = smov 0  }
   0x2   :  { %s1422_s26 = smov 0   ;;  %s1424_s27 = smov 0  }
   0x3 LB: > { %s1439_s28 = sadd.s32 4294967295, %s1373_s27   ;;  %s973_s29 = sadd.s32 4294967294, %s1373_s27   ;;  %s1373_s27 = sphi %s1424_s27, %s1695_s27   ;;  %s1369_s26 = sphi %s1422_s26, %s1694_s26   ;;  %s1365_s25 = sphi %s1420_s25, %s1693_s25   ;;  %s1361_s24 = sphi %s1418_s24, %s1692_s24  }
   0x4   : > { %s1443_s30 = sadd.s32 1, %s1373_s27   ;;  %s179_s8 = sadd.s32 1, %s1369_s26 }
   0x5   : > { %s176_s9 = ssub.s32 %s1373_s27, %s1443_s30  ;;  %p189_p0 = scmp.ne.s32.totalorder %s1369_s26, %s1365_s25 }
   0x6   : > { %p177_p1 = scmp.eq.s32.totalorder %s176_s9, 0  ;;  %p190_p2 = scmp.eq.s32.totalorder %s1439_s28, 3 }
   0x7   : > { %p195_p3 = scmp.ne.s32.totalorder %s1365_s25, %s1361_s24  ;;  %p196_p4 = scmp.eq.s32.totalorder %s973_s29, 3 }
   0x8   : > { %s1454_s10 = scalar_select %p177_p1, %s1369_s26, %s179_s8  }
   0x9   : > { %p1456_p5 = por %p190_p2, %p189_p0  ;;  %p1460_p6 = por %p196_p4, %p195_p3 }
   0xa   : > { %p976_p7 = scmp.ge.s32.totalorder %s1373_s27, 1  ;;  %p241_p8 = scmp.lt.s32.totalorder %s1373_s27, 5 }
   0xc   : > { %p242_p9 = pnand %p976_p7, %p241_p8 }
   0xd   : > { %v288_v0 = vld [vmem:[%s1683_s1] sm:$0xff] (!%p242_p9)  ;;  %v289_v1 = vld [vmem:[%s1683_s1 + $0x8] sm:$0xff] (!%p242_p9)  ;;  %v290_v2 = vld [vmem:[%s1683_s1 + $0x10] sm:$0xff] (!%p242_p9)  ;;  %s978_s19 = sshll.u32 (!%p242_p9), %s1439_s28, 3  ;;  %vm298_vm0 = vcmask (!%p242_p9), 261120   ;;  %s997_s13 = sshll.u32 (!%p242_p9), %s1439_s28, 10 }
   0xe   : > { %245 = sbr.rel (%p242_p9) target bundleno = 684 (0x2ac), region = 48  ;;  %v1158_v3 = vpack.c.bf16 (!%p242_p9), %v289_v1, %v288_v0  ;;  %v291_v4 = vld [vmem:[%s1683_s1 + $0x18] sm:$0xff] (!%p242_p9)  ;;  %p274_p10 = scmp.lt.s32.totalorder (!%p242_p9), %s978_s19, 31  ;;  %v980_v14 = vld [vmem:[%s1684_s2] ss:$0 sm:$0xff] (!%p242_p9) }
   0xf   : > { %v1162_v5 = vpack.c.bf16 (!%p242_p9), %v291_v4, %v290_v2  ;;  %s1635_s17 = scalar_lea.hbm (!%p242_p9), %s1689_s7, %s997_s13 }
  0x10   : > { %1159 = vmatprep.subr.bf16.mxu1 (!%p242_p9), %v1158_v3  ;;  %1199 = vmatprep.subr.bf16.mxu0 (!%p242_p9), %v1158_v3 }
  0x11   : > { %1161 = vmatpush3.bf16.msra.mxu1 (!%p242_p9), %v1158_v3  ;;  %1201 = vmatpush3.bf16.msra.mxu0 (!%p242_p9), %v1158_v3 }
  0x12   : > { %1163 = vmatprep.subr.bf16.mxu1 (!%p242_p9), %v1162_v5  ;;  %1203 = vmatprep.subr.bf16.mxu0 (!%p242_p9), %v1162_v5 }
  0x15   : > { %s1697_s19 = smov (!%p274_p10, %s978_s19), 31  ;;  %1165 = vmatpush3.bf16.msra.mxu1 %v1162_v5  ;;  %1205 = vmatpush3.bf16.msra.mxu0 %v1162_v5 }
  0x16   : > { %s979_s22 = sshll.u32 %s1697_s19, 3  ;;  %s1375_s19 = smov [#allocation2]  }
  0x17   : > { %s277_s8 = scalar_lea.vmem %s1682_s0, %s979_s22  ;;  %s270_s22 = sand.u32 1, %s1365_s25  }
  0x18   : > { %v284_v6 = vld [vmem:[%s277_s8] sm:$0xff]  ;;  %v285_v8 = vld [vmem:[%s277_s8 + $0x8] sm:$0xff]  ;;  %v286_v10 = vld [vmem:[%s277_s8 + $0x10] sm:$0xff]  ;;  %s977_s23 = sshll.u32 %s270_s22, 6  ;;  %s1641_s28 = scalar_lea.sflag [#allocation3], %s270_s22 }
  0x19   : > { %v603_v7 = vld [vmem:[%s277_s8 + $0x20] sm:$0xff]  ;;  %v604_v9 = vld [vmem:[%s277_s8 + $0x28] sm:$0xff]  ;;  %1062 = vmatprep.mubr.msk.f32.mxu1 %vm298_vm0, %v284_v6  ;;  %v605_v11 = vld [vmem:[%s277_s8 + $0x30] sm:$0xff]  ;;  %s272_s9 = scalar_lea.vmem [#allocation2], %s977_s23  ;;  %s1315_s20 = sshll.u32 %s1375_s19, 4  ;;  %s1316_s20 = int_to_ptr.vmem [resolvable:$false] %s1315_s20 }
  0x1a   : > { %1114 = vmatprep.mubr.msk.f32.mxu0 %vm298_vm0, %v603_v7  ;;  %1063 = vmatmul.mubr.msk.f32.vlgmr.msra.gmra.mrb[0].mxu1 %vm298_vm0, %v285_v8  ;;  %v287_v12 = vld [vmem:[%s277_s8 + $0x18] sm:$0xff]  ;;  %s911_s14 = sshll.u32 %s272_s9, 4  ;;  %s1317_s21 = scalar_lea.vmem %s1316_s20, 2048  ;;  %s1637_s14 = int_to_ptr.vmem [resolvable:$true] %s911_s14 }
  0x1b   : > { %1115 = vmatmul.mubr.msk.f32.vlgmr.msra.gmra.mrb[0].mxu0 %vm298_vm0, %v604_v9  ;;  %1065 = vmatprep.mubr.msk.f32.mxu1 %vm298_vm0, %v286_v10  ;;  %v606_v13 = vld [vmem:[%s277_s8 + $0x38] sm:$0xff]  ;;  %s1311_s18 = scalar_lea.vmem %s1637_s14, 1024  ;;  %p1318_p0 = scmp.lt.s32.totalorder %s1637_s14, %s1316_s20 }
  0x1c   : > { %1117 = vmatprep.mubr.msk.f32.mxu0 %vm298_vm0, %v605_v11  ;;  %v792_v11 = vld [vmem:[%s1687_s5] sm:$0xff]  ;;  %p1312_p11 = scmp.ne.s32.totalorder %s1637_s14, %s1311_s18  ;;  %p1319_p1 = scmp.lt.s32.totalorder %s1317_s21, %s1311_s18 }
  0x1e   : > { %1066 = vmatmul.mubr.msk.f32.gmra.mrb[2].mxu1 %vm298_vm0, %v287_v12  ;;  %v793_v12 = vld [vmem:[%s1687_s5 + $0x8] sm:$0xff]  ;;  %p1313_p12 = pnand %p1312_p11, %p1456_p5  ;;  %p1320_p2 = por %p1319_p1, %p1318_p0 }
  0x1f   : > { %1118 = vmatmul.mubr.msk.f32.gmra.mrb[2].mxu0 %vm298_vm0, %v606_v13  ;;  %v1206_v13 = vpack.c.bf16 %v793_v12, %v792_v11 }
  0x20   : > { %p1314_p13 = pneg %p1313_p12 }
  0x21   : > { %1207 = vmatprep.subr.bf16.mxu0 %v1206_v13  ;;  %1167 = vmatprep.subr.bf16.mxu1 %v1206_v13 }
  0x22   : > { %1209 = vmatpush3.bf16.msra.mxu0 %v1206_v13  ;;  %1169 = vmatpush3.bf16.msra.mxu1 %v1206_v13  ;;  %p1321_p3 = pnand %p1320_p2, %p1314_p13 }
  0xed   : > { %v1064_v15 = vpop.f32.mrb[0].mxu1 }
  0xee   : > { %v1116_v16 = vpop.f32.mrb[0].mxu0  ;;  %v383_v17 = vadd.f32 %v1064_v15, %v980_v14  ;;  %v377_v19 = vpop.f32.mrb[1].mxu1 }
  0xef   : > { %v695_v18 = vadd.f32 %v1116_v16, %v980_v14  ;;  %v689_v20 = vpop.f32.mrb[1].mxu0  ;;  %v378_v21 = vadd.f32 %v980_v14, %v377_v19  ;;  %v794_v16 = vld [vmem:[%s1687_s5 + $0x10] sm:$0xff] }
  0xf0   : > { %v690_v22 = vadd.f32 %v980_v14, %v689_v20  ;;  %v401_v23 = vmul.f32 0.70710677, %v383_v17  ;;  %v397_v39 = vmul.f32 0.5, %v383_v17  ;;  %v795_v17 = vld [vmem:[%s1687_s5 + $0x18] sm:$0xff] }
  0xf1   : > { %v713_v24 = vmul.f32 0.70710677, %v695_v18  ;;  %v400_v25 = vmul.f32 0.70710677, %v378_v21  ;;  %v1067_v27 = vpop.f32.mrb[2].mxu1  ;;  %v396_v45 = vmul.f32 0.5, %v378_v21 }
  0xf2   : > { %v712_v26 = vmul.f32 0.70710677, %v690_v22  ;;  %1279 = verf.f32 %v401_v23  ;;  %v1119_v28 = vpop.f32.mrb[2].mxu0  ;;  %v387_v29 = vpop.f32.mrb[3].mxu1  ;;  %v393_v32 = vadd.f32 %v1067_v27, %v980_v14  ;;  %v709_v49 = vmul.f32 0.5, %v695_v18  ;;  %v796_v21 = vld [vmem:[%s1687_s5 + $0x20] sm:$0xff] }
  0xf3   : > { %1281 = verf.f32 %v713_v24  ;;  %v699_v30 = vpop.f32.mrb[3].mxu0  ;;  %v705_v31 = vadd.f32 %v1119_v28, %v980_v14  ;;  %v388_v37 = vadd.f32 %v980_v14, %v387_v29  ;;  %v708_v52 = vmul.f32 0.5, %v690_v22  ;;  %v797_v22 = vld [vmem:[%s1687_s5 + $0x28] sm:$0xff]  ;;  %v798_v24 = vld [vmem:[%s1687_s5 + $0x30] sm:$0xff]  ;;  %v800_v27 = vld [vmem:[%s1687_s5 + $0x40] sm:$0xff] }
  0xf4   : > { %1283 = verf.f32 %v400_v25  ;;  %v700_v34 = vadd.f32 %v980_v14, %v699_v30  ;;  %v403_v36 = vmul.f32 0.70710677, %v393_v32  ;;  %v399_v63 = vmul.f32 0.5, %v393_v32  ;;  %v799_v25 = vld [vmem:[%s1687_s5 + $0x38] sm:$0xff]  ;;  %v801_v28 = vld [vmem:[%s1687_s5 + $0x48] sm:$0xff]  ;;  %v802_v30 = vld [vmem:[%s1687_s5 + $0x50] sm:$0xff] }
  0xf5   : > { %1285 = verf.f32 %v712_v26  ;;  %v715_v33 = vmul.f32 0.70710677, %v705_v31  ;;  %v402_v48 = vmul.f32 0.70710677, %v388_v37  ;;  %v711_v59 = vmul.f32 0.5, %v705_v31  ;;  %v803_v31 = vld [vmem:[%s1687_s5 + $0x58] sm:$0xff] }
  0xf6   : > { %v714_v42 = vmul.f32 0.70710677, %v700_v34  ;;  %v710_v3 = vmul.f32 0.5, %v700_v34  ;;  %v398_v6 = vmul.f32 0.5, %v388_v37  ;;  %v1210_v18 = vpack.c.bf16 %v795_v17, %v794_v16  ;;  %v805_v34 = vld [vmem:[%s1687_s5 + $0x68] sm:$0xff]  ;;  %v807_v37 = vld [vmem:[%s1687_s5 + $0x78] sm:$0xff] }
  0xf7   : > { %1287 = verf.f32 %v715_v33  ;;  %v1214_v23 = vpack.c.bf16 %v797_v22, %v796_v21  ;;  %v1218_v26 = vpack.c.bf16 %v799_v25, %v798_v24  ;;  %v1222_v29 = vpack.c.bf16 %v801_v28, %v800_v27  ;;  %v804_v33 = vld [vmem:[%s1687_s5 + $0x60] sm:$0xff] }
  0xf8   : > { %1289 = verf.f32 %v403_v36  ;;  %1211 = vmatprep.subr.bf16.mxu0 %v1210_v18  ;;  %1171 = vmatprep.subr.bf16.mxu1 %v1210_v18  ;;  %v1226_v32 = vpack.c.bf16 %v803_v31, %v802_v30  ;;  %v806_v36 = vld [vmem:[%s1687_s5 + $0x70] sm:$0xff] }
  0xf9   : > { %1291 = verf.f32 %v714_v42  ;;  %1213 = vmatpush3.bf16.msra.mxu0 %v1210_v18  ;;  %1173 = vmatpush3.bf16.msra.mxu1 %v1210_v18 }
  0xfa   : > { %1293 = verf.f32 %v402_v48  ;;  %1215 = vmatprep.subr.bf16.mxu0 %v1214_v23  ;;  %1175 = vmatprep.subr.bf16.mxu1 %v1214_v23 }
  0xfc   : > { %v1280_v35 = vpop.eup %1279 }
  0xfd   : > { %v1282_v38 = vpop.eup %1281  ;;  %v409_v40 = vadd.f32 1.0, %v1280_v35  ;;  %1217 = vmatpush3.bf16.msra.mxu0 %v1214_v23  ;;  %1177 = vmatpush3.bf16.msra.mxu1 %v1214_v23  ;;  %v1230_v35 = vpack.c.bf16 %v805_v34, %v804_v33 }
  0xfe   : > { %v1284_v41 = vpop.eup %1283  ;;  %v721_v44 = vadd.f32 1.0, %v1282_v38  ;;  %1219 = vmatprep.subr.bf16.mxu0 %v1218_v26  ;;  %1179 = vmatprep.subr.bf16.mxu1 %v1218_v26  ;;  %v1234_v38 = vpack.c.bf16 %v807_v37, %v806_v36 }
  0xff   : > { %v1286_v43 = vpop.eup %1285  ;;  %v408_v46 = vadd.f32 1.0, %v1284_v41  ;;  %v1493_v47 = vmul.f32 %v409_v40, %v397_v39 }
 0x100   : > { %v720_v50 = vadd.f32 1.0, %v1286_v43  ;;  %v1499_v53 = vmul.f32 %v721_v44, %v709_v49 }
 0x101   : > { %418 = vadd.xlane.f32.xlu1 %v1493_v47  ;;  %v1496_v51 = vmul.f32 %v408_v46, %v396_v45  ;;  %v1288_v56 = vpop.eup %1287  ;;  %v429_v57 = vmul.f32 %v1493_v47, %v1493_v47  ;;  %1221 = vmatpush3.bf16.msra.mxu0 %v1218_v26 }
 0x102   : > { %v1502_v54 = vmul.f32 %v720_v50, %v708_v52  ;;  %v741_v55 = vmul.f32 %v1499_v53, %v1499_v53  ;;  %v1290_v58 = vpop.eup %1289  ;;  %v723_v60 = vadd.f32 1.0, %v1288_v56  ;;  %1181 = vmatpush3.bf16.msra.mxu1 %v1218_v26  ;;  %1223 = vmatprep.subr.bf16.mxu0 %v1222_v29 }
 0x103   : > { %416 = vadd.xlane.f32.xlu0 %v1496_v51  ;;  %v1292_v62 = vpop.eup %1291  ;;  %v411_v0 = vadd.f32 1.0, %v1290_v58  ;;  %v428_v1 = vmul.f32 %v1496_v51, %v1496_v51  ;;  %1183 = vmatprep.subr.bf16.mxu1 %v1222_v29 }
 0x104   : > { %v740_v61 = vmul.f32 %v1502_v54, %v1502_v54  ;;  %v1294_v2 = vpop.eup %1293  ;;  %v722_v4 = vadd.f32 1.0, %v1292_v62  ;;  %v1513_v5 = vmul.f32 %v723_v60, %v711_v59 }
 0x105   : > { %730 = vadd.xlane.f32.xlu1 %v1499_v53  ;;  %v410_v7 = vadd.f32 1.0, %v1294_v2  ;;  %v1516_v8 = vmul.f32 %v411_v0, %v399_v63  ;;  %1225 = vmatpush3.bf16.msra.mxu0 %v1222_v29 }
 0x106   : > { %v1519_v9 = vmul.f32 %v722_v4, %v710_v3  ;;  %v743_v19 = vmul.f32 %v1513_v5, %v1513_v5  ;;  %1185 = vmatpush3.bf16.msra.mxu1 %v1222_v29  ;;  %1227 = vmatprep.subr.bf16.mxu0 %v1226_v32 }
 0x107   : > { %728 = vadd.xlane.f32.xlu0 %v1502_v54  ;;  %v1522_v10 = vmul.f32 %v410_v7, %v398_v6  ;;  %v431_v20 = vmul.f32 %v1516_v8, %v1516_v8  ;;  %1187 = vmatprep.subr.bf16.mxu1 %v1226_v32 }
 0x108   : > { %v742_v14 = vmul.f32 %v1519_v9, %v1519_v9 }
 0x109   : > { %746 = vadd.xlane.f32.xlu1 %v741_v55  ;;  %v430_v15 = vmul.f32 %v1522_v10, %v1522_v10  ;;  %1229 = vmatpush3.bf16.msra.mxu0 %v1226_v32 }
 0x10a   : > { %1189 = vmatpush3.bf16.msra.mxu1 %v1226_v32  ;;  %1231 = vmatprep.subr.bf16.mxu0 %v1230_v35 }
 0x10b   : > { %434 = vadd.xlane.f32.xlu0 %v429_v57  ;;  %1191 = vmatprep.subr.bf16.mxu1 %v1230_v35 }
 0x10d   : > { %744 = vadd.xlane.f32.xlu1 %v740_v61  ;;  %1233 = vmatpush3.bf16.msra.mxu0 %v1230_v35 }
 0x10e   : > { %1193 = vmatpush3.bf16.msra.mxu1 %v1230_v35  ;;  %1235 = vmatprep.subr.bf16.mxu0 %v1234_v38 }
 0x10f   : > { %432 = vadd.xlane.f32.xlu0 %v428_v1  ;;  %1195 = vmatprep.subr.bf16.mxu1 %v1234_v38 }
 0x111   : > { %734 = vadd.xlane.f32.xlu1 %v1513_v5  ;;  %1237 = vmatpush3.bf16.msra.mxu0 %v1234_v38 }
 0x112   : > { %1197 = vmatpush3.bf16.msra.mxu1 %v1234_v38 }
 0x113   : > { %422 = vadd.xlane.f32.xlu0 %v1516_v8 }
 0x115   : > { %732 = vadd.xlane.f32.xlu1 %v1519_v9 }
 0x117   : > { %420 = vadd.xlane.f32.xlu0 %v1522_v10 }
 0x119   : > { %748 = vadd.xlane.f32.xlu1 %v742_v14 }
 0x11b   : > { %436 = vadd.xlane.f32.xlu0 %v430_v15 }
 0x11d   : > { %750 = vadd.xlane.f32.xlu1 %v743_v19 }
 0x11f   : > { %438 = vadd.xlane.f32.xlu0 %v431_v20 }
 0x18e   : > { %v419_v39 = vpop.xlane.xlu1 %418 }
 0x18f   : > { %v425_v44 = vmul.f32 0.041666668, %v419_v39  ;;  %v985_v39 = vld [vmem:[%s1685_s3] ss:$0 sm:$0xff] }
 0x190   : > { %v417_v40 = vpop.xlane.xlu0 %416 }
 0x191   : > { %v1583_v50 = vmul.f32 0.041666668, %v417_v40  ;;  %v445_v55 = vmul.f32 %v425_v44, %v425_v44  ;;  %v457_v32 = vsub.f32 %v1493_v47, %v425_v44 }
 0x192   : > { %v731_v41 = vpop.xlane.xlu1 %730 }
 0x193   : > { %v737_v42 = vmul.f32 0.041666668, %v731_v41  ;;  %v444_v63 = vmul.f32 %v1583_v50, %v1583_v50 }
 0x194   : > { %v729_v43 = vpop.xlane.xlu0 %728 }
 0x195   : > { %v757_v46 = vmul.f32 %v737_v42, %v737_v42  ;;  %v1581_v48 = vmul.f32 0.041666668, %v729_v43  ;;  %v769_v25 = vsub.f32 %v1499_v53, %v737_v42 }
 0x196   : > { %v747_v45 = vpop.xlane.xlu1 %746 }
 0x197   : > { %v753_v49 = vmul.f32 0.041666668, %v747_v45  ;;  %v756_v59 = vmul.f32 %v1581_v48, %v1581_v48  ;;  %v768_v40 = vsub.f32 %v1502_v54, %v1581_v48  ;;  %v986_v48 = vld [vmem:[%s1686_s4] ss:$0 sm:$0xff] }
 0x198   : > { %v435_v52 = vpop.xlane.xlu0 %434 }
 0x199   : > { %v761_v56 = vsub.f32 %v753_v49, %v757_v46  ;;  %v441_v57 = vmul.f32 0.041666668, %v435_v52  ;;  %v456_v52 = vsub.f32 %v1496_v51, %v1583_v50 }
 0x19a   : > { %v745_v58 = vpop.xlane.xlu1 %744 }
 0x19b   : > { %v765_v60 = vmax.f32 %v761_v56, 0.0  ;;  %v449_v61 = vsub.f32 %v441_v57, %v445_v55  ;;  %v752_v62 = vmul.f32 0.041666668, %v745_v58 }
 0x19c   : > { %v433_v0 = vpop.xlane.xlu0 %432 }
 0x19d   : > { %v773_v1 = vadd.f32 1e-05, %v765_v60  ;;  %v453_v2 = vmax.f32 %v449_v61, 0.0  ;;  %v760_v3 = vsub.f32 %v752_v62, %v756_v59  ;;  %v440_v4 = vmul.f32 0.041666668, %v433_v0 }
 0x19e   : > { %v735_v6 = vpop.xlane.xlu1 %734 }
 0x19f   : > { %1295 = vrsqrt.f32 %v773_v1  ;;  %v461_v7 = vadd.f32 1e-05, %v453_v2  ;;  %v764_v11 = vmax.f32 %v760_v3, 0.0  ;;  %v448_v12 = vsub.f32 %v440_v4, %v444_v63 }
 0x1a0   : > { %v423_v13 = vpop.xlane.xlu0 %422  ;;  %v1593_v22 = vmul.f32 0.041666668, %v735_v6 }
 0x1a1   : > { %1297 = vrsqrt.f32 %v461_v7  ;;  %v772_v14 = vadd.f32 1e-05, %v764_v11  ;;  %v452_v15 = vmax.f32 %v448_v12, 0.0  ;;  %v1598_v26 = vmul.f32 0.041666668, %v423_v13 }
 0x1a2   : > { %v733_v16 = vpop.xlane.xlu1 %732  ;;  %v759_v36 = vmul.f32 %v1593_v22, %v1593_v22 }
 0x1a3   : > { %1299 = vrsqrt.f32 %v772_v14  ;;  %v460_v17 = vadd.f32 1e-05, %v452_v15  ;;  %v1589_v18 = vmul.f32 0.041666668, %v733_v16  ;;  %v447_v47 = vmul.f32 %v1598_v26, %v1598_v26 }
 0x1a4   : > { %v421_v19 = vpop.xlane.xlu0 %420  ;;  %v771_v14 = vsub.f32 %v1513_v5, %v1593_v22 }
 0x1a5   : > { %1301 = vrsqrt.f32 %v460_v17  ;;  %v1591_v20 = vmul.f32 0.041666668, %v421_v19  ;;  %v758_v23 = vmul.f32 %v1589_v18, %v1589_v18  ;;  %v770_v6 = vsub.f32 %v1519_v9, %v1589_v18 }
 0x1a6   : > { %v749_v21 = vpop.xlane.xlu1 %748  ;;  %v459_v19 = vsub.f32 %v1516_v8, %v1598_v26  ;;  %v987_v8 = vld [vmem:[%s1688_s6] ss:$0 sm:$0xff] }
 0x1a7   : > { %v754_v24 = vmul.f32 0.041666668, %v749_v21  ;;  %v446_v29 = vmul.f32 %v1591_v20, %v1591_v20  ;;  %v458_v11 = vsub.f32 %v1522_v10, %v1591_v20 }
 0x1a8   : > { %v437_v27 = vpop.xlane.xlu0 %436 }
 0x1a9   : > { %v1296_v28 = vpop.eup %1295  ;;  %v762_v30 = vsub.f32 %v754_v24, %v758_v23  ;;  %v442_v31 = vmul.f32 0.041666668, %v437_v27 }
 0x1aa   : > { %v781_v33 = vmul.f32 %v1296_v28, %v769_v25  ;;  %v751_v34 = vpop.xlane.xlu1 %750 }
 0x1ab   : > { %v1298_v35 = vpop.eup %1297  ;;  %v766_v37 = vmax.f32 %v762_v30, 0.0  ;;  %v450_v38 = vsub.f32 %v442_v31, %v446_v29  ;;  %v755_v53 = vmul.f32 0.041666668, %v751_v34 }
 0x1ac   : > { %v469_v41 = vmul.f32 %v1298_v35, %v457_v32  ;;  %v439_v42 = vpop.xlane.xlu0 %438  ;;  %v785_v56 = vmul.f32 %v985_v39, %v781_v33 }
 0x1ad   : > { %v1300_v43 = vpop.eup %1299  ;;  %v774_v44 = vadd.f32 1e-05, %v766_v37  ;;  %v454_v45 = vmax.f32 %v450_v38, 0.0  ;;  %v763_v46 = vsub.f32 %v755_v53, %v759_v36  ;;  %v443_v49 = vmul.f32 0.041666668, %v439_v42 }
 0x1ae   : > { %v780_v55 = vmul.f32 %v1300_v43, %v768_v40  ;;  %v479_v0 = vmul.f32 %v985_v39, %v469_v41  ;;  %v789_v50 = vadd.f32 %v986_v48, %v785_v56 }
 0x1af   : > { %v1302_v57 = vpop.eup %1301  ;;  %1303 = vrsqrt.f32 %v774_v44  ;;  %v462_v58 = vadd.f32 1e-05, %v454_v45  ;;  %v767_v59 = vmax.f32 %v763_v46, 0.0  ;;  %v451_v54 = vsub.f32 %v443_v49, %v447_v47 }
 0x1b0   : > { %v784_v60 = vmul.f32 %v985_v39, %v780_v55  ;;  %v468_v61 = vmul.f32 %v1302_v57, %v456_v52  ;;  %v489_v4 = vadd.f32 %v986_v48, %v479_v0 }
 0x1b1   : > { %1305 = vrsqrt.f32 %v462_v58  ;;  %v775_v62 = vadd.f32 1e-05, %v767_v59  ;;  %v455_v63 = vmax.f32 %v451_v54, 0.0 }
 0x1b2   : > { %v788_v1 = vadd.f32 %v986_v48, %v784_v60  ;;  %v478_v2 = vmul.f32 %v985_v39, %v468_v61 }
 0x1b3   : > { %1307 = vrsqrt.f32 %v775_v62  ;;  %v463_v51 = vadd.f32 1e-05, %v455_v63 }
 0x1b4   : > { %1152 = vmatprep.mubr.f32.mxu0 %v788_v1  ;;  %v488_v3 = vadd.f32 %v986_v48, %v478_v2 }
 0x1b5   : > { %1309 = vrsqrt.f32 %v463_v51  ;;  %1153 = vmatmul.mubr.f32.vlgmr.msra.gmra.mrb[4].mxu0 %v789_v50 }
 0x1b6   : > { %1100 = vmatprep.mubr.f32.mxu1 %v488_v3 }
 0x1b7   : > { %1101 = vmatmul.mubr.f32.vlgmr.msra.gmra.mrb[4].mxu1 %v489_v4 }
 0x1b9   : > { %v1304_v7 = vpop.eup %1303 }
 0x1ba   : > { %v782_v12 = vmul.f32 %v1304_v7, %v770_v6 }
 0x1bb   : > { %v1306_v13 = vpop.eup %1305 }
 0x1bc   : > { %v786_v15 = vmul.f32 %v985_v39, %v782_v12  ;;  %v470_v16 = vmul.f32 %v1306_v13, %v458_v11 }
 0x1bd   : > { %v1308_v17 = vpop.eup %1307 }
 0x1be   : > { %v790_v21 = vadd.f32 %v986_v48, %v786_v15  ;;  %v480_v23 = vmul.f32 %v985_v39, %v470_v16  ;;  %v783_v9 = vmul.f32 %v1308_v17, %v771_v14 }
 0x1bf   : > { %v1310_v18 = vpop.eup %1309 }
 0x1c0   : > { %1155 = vmatprep.mubr.f32.mxu0 %v790_v21  ;;  %v490_v24 = vadd.f32 %v986_v48, %v480_v23  ;;  %v787_v10 = vmul.f32 %v985_v39, %v783_v9  ;;  %v471_v20 = vmul.f32 %v1310_v18, %v459_v19 }
 0x1c2   : > { %1103 = vmatprep.mubr.f32.mxu1 %v490_v24  ;;  %v791_v25 = vadd.f32 %v986_v48, %v787_v10  ;;  %v481_v27 = vmul.f32 %v985_v39, %v471_v20 }
 0x1c4   : > { %1156 = vmatmul.mubr.f32.gmra.mrb[6].mxu0 %v791_v25  ;;  %v491_v5 = vadd.f32 %v986_v48, %v481_v27 }
 0x1c6   : > { %1104 = vmatmul.mubr.f32.gmra.mrb[6].mxu1 %v491_v5 }
 0x288   : > { %v1154_v22 = vpop.f32.mrb[4].mxu0 }
 0x289   : > { %v880_v26 = vadd.f32 %v1154_v22, %v987_v8  ;;  %v874_v28 = vpop.f32.mrb[5].mxu0 }
 0x28a   : > { %v1102_v29 = vpop.f32.mrb[4].mxu1  ;;  %v875_v30 = vadd.f32 %v987_v8, %v874_v28 }
 0x28b   : > { %894 = vst [vmem:[%s272_s9 + $0x28] sm:$0xff] %v880_v26  ;;  %v586_v31 = vadd.f32 %v1102_v29, %v987_v8  ;;  %v580_v32 = vpop.f32.mrb[5].mxu1 }
 0x28c   : > { %893 = vst [vmem:[%s272_s9 + $0x20] sm:$0xff] %v875_v30  ;;  %v581_v33 = vadd.f32 %v987_v8, %v580_v32 }
 0x28d   : > { %600 = vst [vmem:[%s272_s9 + $0x8] sm:$0xff] %v586_v31 }
 0x28e   : > { %599 = vst [vmem:[%s272_s9] sm:$0xff] %v581_v33 }
 0x297   : > { %v1157_v34 = vpop.f32.mrb[6].mxu0 }
 0x298   : > { %v890_v35 = vadd.f32 %v1157_v34, %v987_v8  ;;  %v884_v36 = vpop.f32.mrb[7].mxu0 }
 0x299   : > { %v1105_v37 = vpop.f32.mrb[6].mxu1  ;;  %v885_v38 = vadd.f32 %v987_v8, %v884_v36 }
 0x29a   : > { %896 = vst [vmem:[%s272_s9 + $0x38] sm:$0xff] %v890_v35  ;;  %v596_v53 = vadd.f32 %v1105_v37, %v987_v8  ;;  %v590_v39 = vpop.f32.mrb[7].mxu1 }
 0x29b   : > { %895 = vst [vmem:[%s272_s9 + $0x30] sm:$0xff] %v885_v38  ;;  %v591_v40 = vadd.f32 %v987_v8, %v590_v39 }
 0x29c   : > { %602 = vst [vmem:[%s272_s9 + $0x18] sm:$0xff] %v596_v53 }
 0x29d   : > { %601 = vst [vmem:[%s272_s9 + $0x10] sm:$0xff] %v591_v40 }
 0x29e   : > { %1324 = shalt.err (!%p1321_p3)
}
 0x29f   : > { %s1325_s22 = scalar_lea.hbm %s1635_s17, 1024  ;;  %s1329_s8 = scalar_lea.hbm %s1689_s7, 4096 }
 0x2a0   : > { %p1326_p4 = scmp.ne.s32.totalorder %s1635_s17, %s1325_s22  ;;  %p1330_p9 = scmp.lt.u32.totalorder %s1635_s17, %s1689_s7 }
 0x2a1   : > { %p1331_p10 = scmp.lt.u32.totalorder %s1329_s8, %s1325_s22  ;;  %p1333_p12 = scmp.lt.u32.totalorder %s1325_s22, %s1635_s17 }
 0x2a2   : > { %p1327_p7 = pnand %p1326_p4, %p1456_p5 }
 0x2a3   : > { %p1332_p11 = por %p1331_p10, %p1330_p9 }
 0x2a4   : > { %p1328_p8 = pneg %p1327_p7 }
 0x2a5   : > { %p1334_p13 = por %p1333_p12, %p1332_p11 }
 0x2a7   : > { %p1335_p0 = pnand %p1334_p13, %p1328_p8 }
 0x2a9   : > { %1338 = shalt.err (!%p1335_p0)
}
 0x2aa   : > { %s1376_s15 = smov 128   ;;  %s1377_s16 = smov 8  }
 0x2ab   : > { %1238 = dma.vmem_to_hbm [thread:$0]  (%p1456_p5), %s1637_s14, 1024, %s1635_s17, %s1641_s28, %s1376_s15, %s1376_s15, %s1377_s16  }
 0x2ac PF: > { %p1244_p1 = scmp.ge.s32.totalorder %s1373_s27, 2  ;;  %s926_s18 = sand.u32 1, %s1361_s24  }
 0x2ad   : > { %s927_s19 = scalar_lea.sflag [#allocation3], %s926_s18 }
 0x2ae   : > { %p1241_p2 = pnand %p1244_p1, %p1460_p6 }
 0x2b0   : > { %1356 = dma.done.wait (!%p1241_p2), %s927_s19, 1024  }
 0x2b1   : > { %1358 = vsyncadd (!%p1241_p2), %s927_s19, 4294966272  ;;  %p17_p3 = scmp.ge.s32.totalorder %s1443_s30, 6   ;;  %s1692_s24 = smov %s1365_s25 }
 0x2b2   : > { %s1693_s25 = smov %s1369_s26  ;;  %s1694_s26 = smov %s1454_s10 }
 0x2b3   : > { %s1695_s27 = smov %s1443_s30  ;;  %19 = sbr.rel (!%p17_p3) target bundleno = 3 (0x3), region = 83 }
 0x2ba   :  { %932 = vsyncpa [#allocation3], 1 }
 0x2bb   :  { %934 = vsyncpa [#allocation3 + $0x1], 1 }

</bundles_post_ra>
